<compile_context>
chip_gen: v7x
topology: tpu7x:2x2x1
jax: 0.10.0
libtpu: 0.0.40
codegen_flags: <defaults>
</compile_context>

<pallas_src>
import numpy as np
import jax
import jax.numpy as jnp
from jax.experimental import pallas as pl
from jax.experimental.pallas import tpu as pltpu

# ----------------------------- MANO constants -------------------------------
NV = 778                     # vertices per hand
NVP = 896                    # vertices padded to 7*128 lanes
NJ = 16                      # kinematic joints
NC = 45                      # PCA pose components (ncomps=45)
NPD = 9 * (NJ - 1)           # 135 pose-blend features
KPAD = 144                   # NPD padded to the bf16 sublane tile (16)
NB = 10                      # shape betas
NF = 1538                    # faces per hand
PARENTS = (-1, 0, 1, 2, 0, 4, 5, 0, 7, 8, 0, 10, 11, 0, 13, 14)
JOINT_REORDER = (0, 13, 14, 15, 16, 1, 2, 3, 17, 4, 5, 6, 18,
                 10, 11, 12, 19, 7, 8, 9, 20)
TIP_IDX = {"right": (745, 317, 444, 556, 673),
           "left":  (745, 317, 445, 556, 673)}


# ------------------------------ Pallas kernel --------------------------------
# One grid step handles H hands for the whole batch B.  All per-hand blocks are
# coordinate-major with 896 padded vertices on the lane axis.  Row order of the
# (3B, .) blocks is (b, c) with the output coordinate c innermost.
#
#   pf_ref   : (H, 3B, 144)      pose-blend features (R - I), replicated over c, bf16
#   a_ref    : (H, 4, 3B, 16)    A[j, c, k] rows, k outermost, cols = joint j, f32
#   pd_ref   : (H, 144, 3*896)   posedirs, bf16, lane layout [c*896 + vertex]
#   vshp_ref : (H, 1, 3*896)     shaped rest vertices, coordinate-major flat, f32
#   wt_ref   : (H, 16, 896)      skinning weights (joint-major), f32
#   out_ref  : (H, 3B, 896)      posed vertices, rows (b, c), f32
def _mano_lbs_kernel(pf_ref, a_ref, pd_ref, vshp_ref, wt_ref, out_ref):
    H = pf_ref.shape[0]
    for h in range(H):
        # Fused pose-blend matmul: M=3B, K=144, N=3*896, bf16 in / f32 acc.
        blend = jnp.dot(pf_ref[h], pd_ref[h],
                        preferred_element_type=jnp.float32)        # (3B, 3*NVP)
        # Shaped rest vertices (f32) broadcast over the 3B sublanes.
        vp = blend + vshp_ref[h]                                   # (3B, 3*NVP)

        # Per-vertex skinning matrix rows, one small f32 matmul per column k.
        wt = wt_ref[h]                                             # (16, NVP)
        m0 = jnp.dot(a_ref[h, 0], wt, preferred_element_type=jnp.float32)
        m1 = jnp.dot(a_ref[h, 1], wt, preferred_element_type=jnp.float32)
        m2 = jnp.dot(a_ref[h, 2], wt, preferred_element_type=jnp.float32)
        m3 = jnp.dot(a_ref[h, 3], wt, preferred_element_type=jnp.float32)

        # Vectorized LBS combine on dense (3B, 896) tiles; lane slices of vp are
        # aligned to multiples of 896 = 7*128.  One dense store per hand.
        out_ref[h] = (m0 * vp[:, 0 * NVP:1 * NVP] +
                      m1 * vp[:, 1 * NVP:2 * NVP] +
                      m2 * vp[:, 2 * NVP:3 * NVP] +
                      m3)


def mano_lbs_pallas(pf_bc, a4, pd_k, vshp_flat, w_t, hands_per_step=1):
    """pf_bc:[O,3B,144](bf16)  a4:[O,4,3B,16](f32)  pd_k:[O,144,3*NVP](bf16)
    vshp_flat:[O,1,3*NVP](f32)  w_t:[O,16,NVP](f32)  ->  [O,3B,NVP] f32."""
    O, M3B, K = pf_bc.shape
    H = hands_per_step
    assert O % H == 0
    return pl.pallas_call(
        _mano_lbs_kernel,
        out_shape=jax.ShapeDtypeStruct((O, M3B, NVP), jnp.float32),
        grid=(O // H,),
        in_specs=[
            pl.BlockSpec((H, M3B, K), lambda o: (o, 0, 0)),
            pl.BlockSpec((H, 4, M3B, NJ), lambda o: (o, 0, 0, 0)),
            pl.BlockSpec((H, KPAD, 3 * NVP), lambda o: (o, 0, 0)),
            pl.BlockSpec((H, 1, 3 * NVP), lambda o: (o, 0, 0)),
            pl.BlockSpec((H, NJ, NVP), lambda o: (o, 0, 0)),
        ],
        out_specs=pl.BlockSpec((H, M3B, NVP), lambda o: (o, 0, 0)),
        compiler_params=pltpu.CompilerParams(
            dimension_semantics=("parallel",)),
    )(pf_bc, a4, pd_k, vshp_flat, w_t)


def _lbs_reference(pf_bc, a4, pd_k, vshp_flat, w_t):
    """Pure-JAX reference of the Pallas kernel (same bf16 rounding of inputs)."""
    hi = jax.lax.Precision.HIGHEST
    pf = pf_bc.astype(jnp.float32)
    blend = jnp.einsum("omk,okn->omn", pf, pd_k.astype(jnp.float32),
                       precision=hi)                               # [O,3B,3*NVP]
    vp = blend + vshp_flat                                         # [O,3B,3*NVP]
    m = jnp.einsum("okmj,ojn->okmn", a4, w_t, precision=hi)        # [O,4,3B,NVP]
    return (m[:, 0] * vp[..., 0 * NVP:1 * NVP] +
            m[:, 1] * vp[..., 1 * NVP:2 * NVP] +
            m[:, 2] * vp[..., 2 * NVP:3 * NVP] +
            m[:, 3])                                               # [O,3B,NVP]


def _default_hands_per_step(num_obj: int) -> int:
    """Fold hands into one grid step on single-TensorCore parts (v5e/v6e)."""
    try:
        kind = jax.devices()[0].device_kind.lower()
    except Exception:
        return 1
    single_tc = any(tag in kind for tag in ("v5 lite", "v5e", "v6 lite", "v6e"))
    return num_obj if single_tc else 1


# ------------------------------- glue helpers --------------------------------
def _rodrigues(aa):
    """Axis-angle [..., 3] -> rotation matrices [..., 3, 3]."""
    # TODO(synk): near-zero-angle handling differs slightly from manopth (eps trick).
    theta = jnp.sqrt(jnp.sum(aa * aa, axis=-1, keepdims=True) + 1e-12)
    x, y, z = jnp.moveaxis(aa / theta, -1, 0)
    c = jnp.cos(theta)[..., 0]
    s = jnp.sin(theta)[..., 0]
    C = 1.0 - c
    R = jnp.stack([
        jnp.stack([c + x * x * C, x * y * C - z * s, x * z * C + y * s], -1),
        jnp.stack([y * x * C + z * s, c + y * y * C, y * z * C - x * s], -1),
        jnp.stack([z * x * C - y * s, z * y * C + x * s, c + z * z * C], -1),
    ], -2)
    return R


def _with_zeros(R, t):
    """R [...,3,3], t [...,3] -> rigid transform [...,4,4]."""
    top = jnp.concatenate([R, t[..., None]], axis=-1)
    bottom = jnp.broadcast_to(jnp.asarray([0.0, 0.0, 0.0, 1.0], jnp.float32),
                              top.shape[:-2] + (1, 4))
    return jnp.concatenate([top, bottom], axis=-2)


def _make_mano_layer_params(side: str, seed: int):
    """Deterministic synthetic MANO model parameters (correct shapes)."""
    key = jax.random.fold_in(jax.random.PRNGKey(42), seed)
    ks = jax.random.split(key, 8)
    return dict(
        side=side,
        v_template=0.1 * jax.random.normal(ks[0], (NV, 3), jnp.float32),
        shapedirs=0.01 * jax.random.normal(ks[1], (NV, 3, NB), jnp.float32),
        posedirs=0.01 * jax.random.normal(ks[2], (NV, 3, NPD), jnp.float32),
        j_regressor=jax.nn.softmax(
            4.0 * jax.random.normal(ks[3], (NJ, NV), jnp.float32), axis=-1),
        lbs_weights=jax.nn.softmax(
            4.0 * jax.random.normal(ks[4], (NV, NJ), jnp.float32), axis=-1),
        hands_components=0.2 * jax.random.normal(ks[5], (NC, NC), jnp.float32),
        hands_mean=0.1 * jax.random.normal(ks[6], (NC,), jnp.float32),
        faces=jax.random.randint(ks[7], (NF, 3), 0, NV, jnp.int32),
    )


# ------------------------------ group layer -----------------------------------
class MANOGroupLayerPallas:
    """JAX/Pallas port of hocap_toolkit MANOGroupLayer (synthetic MANO params)."""

    def __init__(self, sides, betas, hands_per_step=None):
        assert len(sides) == len(betas)
        self._sides = list(sides)
        self._num_obj = len(sides)
        self._hands_per_step = (hands_per_step if hands_per_step is not None
                                else _default_hands_per_step(self._num_obj))
        layers = [_make_mano_layer_params(s, i) for i, s in enumerate(sides)]

        betas_j = jnp.stack([jnp.asarray(b, jnp.float32) for b in betas])    # [O,10]
        v_tmpl = jnp.stack([l["v_template"] for l in layers])                # [O,NV,3]
        shapedirs = jnp.stack([l["shapedirs"] for l in layers])              # [O,NV,3,10]
        posedirs = jnp.stack([l["posedirs"] for l in layers])                # [O,NV,3,135]
        j_reg = jnp.stack([l["j_regressor"] for l in layers])                # [O,16,NV]
        weights = jnp.stack([l["lbs_weights"] for l in layers])              # [O,NV,16]
        self._comps = jnp.stack([l["hands_components"] for l in layers])     # [O,45,45]
        self._means = jnp.stack([l["hands_mean"] for l in layers])           # [O,45]
        self._tip_idx = [jnp.asarray(TIP_IDX[s], jnp.int32) for s in sides]

        # shape blend: betas are fixed per layer, fold them in once
        v_shaped = v_tmpl + jnp.einsum("oncb,ob->onc", shapedirs, betas_j)   # [O,NV,3]
        self._j_rest = jnp.einsum("ojn,onc->ojc", j_reg, v_shaped)           # [O,16,3]

        pad = NVP - NV
        O = self._num_obj
        # kernel-side coordinate-major, lane-padded parameter layouts
        vshp_cm = jnp.transpose(v_shaped, (0, 2, 1))                         # [O,3,NV]
        vshp_cm = jnp.pad(vshp_cm, ((0, 0), (0, 0), (0, pad)))               # [O,3,NVP]
        self._vshp_flat = vshp_cm.reshape(O, 1, 3 * NVP)                     # [O,1,3*NVP] f32

        pd = jnp.transpose(posedirs, (0, 3, 2, 1))                           # [O,135,3,NV]
        pd = jnp.pad(pd, ((0, 0), (0, 0), (0, 0), (0, pad)))                 # [O,135,3,NVP]
        pd = pd.reshape(O, NPD, 3 * NVP)
        pd = jnp.pad(pd, ((0, 0), (0, KPAD - NPD), (0, 0)))                  # [O,144,3*NVP]
        self._pd_k = pd.astype(jnp.bfloat16)

        wt = jnp.transpose(weights, (0, 2, 1))                               # [O,16,NV]
        self._w_t = jnp.pad(wt, ((0, 0), (0, 0), (0, pad)))                  # [O,16,NVP] f32

        # buffers mirroring the torch module
        self.f = jnp.concatenate(
            [layers[i]["faces"] + NV * i for i in range(self._num_obj)], axis=0)
        self.root_trans = self._j_rest[:, 0, :]                              # [O,3]

    @property
    def num_obj(self):
        return self._num_obj

    def pose2pt(self, pose):
        p = jnp.stack([pose[:, 51 * i:51 * i + 48] for i in range(self._num_obj)], 1)
        t = jnp.stack([pose[:, 51 * i + 48:51 * i + 51] for i in range(self._num_obj)], 1)
        return p, t

    def _forward(self, pose, inds, lbs_fn):
        if inds is None:
            inds = list(range(self._num_obj))
        inds = list(inds)
        B, O = pose.shape[0], self._num_obj
        p, t = self.pose2pt(pose)                                  # [B,O,48], [B,O,3]

        # ---- glue: PCA pose -> axis-angle -> rotations -> FK (tiny tensors) ----
        root_aa = p[:, :, :3]
        hand_aa = self._means[None] + jnp.einsum("boc,ocd->bod", p[:, :, 3:], self._comps)
        full_pose = jnp.concatenate([root_aa, hand_aa], -1).reshape(B, O, NJ, 3)
        R = _rodrigues(full_pose)                                  # [B,O,16,3,3]
        pf = (R[:, :, 1:] - jnp.eye(3, dtype=jnp.float32)).reshape(B, O, NPD)

        G = [None] * NJ
        G[0] = _with_zeros(R[:, :, 0], jnp.broadcast_to(self._j_rest[:, 0], (B, O, 3)))
        for j in range(1, NJ):
            par = PARENTS[j]
            t_loc = jnp.broadcast_to(self._j_rest[:, j] - self._j_rest[:, par], (B, O, 3))
            G[j] = jnp.einsum("borc,bock->bork", G[par], _with_zeros(R[:, :, j], t_loc))
        G = jnp.stack(G, axis=2)                                   # [B,O,16,4,4]
        j16 = G[..., :3, 3]                                        # posed joints [B,O,16,3]

        jh = jnp.concatenate(
            [jnp.broadcast_to(self._j_rest, (B, O, NJ, 3)),
             jnp.zeros((B, O, NJ, 1), jnp.float32)], axis=-1)
        corr = jnp.einsum("bojrc,bojc->bojr", G, jh)
        A = G - jnp.zeros_like(G).at[..., 3].set(corr)             # relative-to-rest

        # ---- kernel-facing layouts --------------------------------------------
        # pose features replicated over the 3 output coordinates (rows = b*3+c),
        # K padded 135 -> 144, cast to bf16 host-side.
        pf_ob = jnp.transpose(pf, (1, 0, 2))                                  # [O,B,135]
        pf_bc = jnp.broadcast_to(pf_ob[:, :, None, :], (O, B, 3, NPD))
        pf_bc = pf_bc.reshape(O, 3 * B, NPD)
        pf_bc = jnp.pad(pf_bc, ((0, 0), (0, 0), (0, KPAD - NPD))).astype(jnp.bfloat16)

        # transform rows with the homogeneous column index k outermost:
        # a4[o, k, b*3 + c, j] = A[b, o, j, c, k]   (kept in f32 for mm-accuracy)
        a4 = jnp.transpose(A[:, :, :, :3, :], (1, 4, 0, 3, 2))                # [O,4,B,3,16]
        a4 = a4.reshape(O, 4, 3 * B, NJ)

        # ---- hot path: pose-blend + LBS skinning over 778 verts (Pallas) ----
        v_flat = lbs_fn(pf_bc, a4, self._pd_k, self._vshp_flat, self._w_t)    # [O,3B,NVP]
        v_cm = v_flat.reshape(O, B, 3, NVP)
        v_all = jnp.transpose(v_cm[..., :NV], (1, 0, 3, 2))                   # [B,O,NV,3]

        # fingertips + manopth joint reorder, then translation
        tips = jnp.stack([v_all[:, o, self._tip_idx[o]] for o in range(O)], axis=1)
        j_all = jnp.concatenate([j16, tips], axis=2)[:, :, jnp.asarray(JOINT_REORDER)]
        # manopth scales to millimetres (*1000) and MANOLayer divides (/1000): net identity.
        v_all = v_all + t[:, :, None, :]
        j_all = j_all + t[:, :, None, :]

        v = jnp.concatenate([jnp.zeros((B, 0, 3), jnp.float32)]
                            + [v_all[:, i] for i in inds], axis=1)
        j = jnp.concatenate([jnp.zeros((B, 0, 3), jnp.float32)]
                            + [j_all[:, i] for i in inds], axis=1)
        return v, j

    def __call__(self, pose, inds=None):
        fn = lambda *args: mano_lbs_pallas(*args, hands_per_step=self._hands_per_step)
        return self._forward(pose, inds, fn)

    def reference(self, pose, inds=None):
        return self._forward(pose, inds, _lbs_reference)


# ----------------------------------- main -------------------------------------
if __name__ == "__main__":
    key = jax.random.PRNGKey(0)
    k_b0, k_b1, k_p = jax.random.split(key, 3)

    sides = ["right", "left"]
    betas = [np.asarray(0.5 * jax.random.normal(k_b0, (NB,), jnp.float32)),
             np.asarray(0.5 * jax.random.normal(k_b1, (NB,), jnp.float32))]
    layer = MANOGroupLayerPallas(sides, betas)

    # B=8 keeps shapes small while filling 3 full sublane tiles (3B = 24 rows);
    # larger B amortizes the per-call parameter DMA (see perf notes above).
    B = 8
    D = 51 * layer.num_obj                       # 51 dofs per hand (48 pose + 3 trans)
    pose = 0.3 * jax.random.normal(k_p, (B, D), jnp.float32)

    v, j = layer(pose)
    v = jax.block_until_ready(v)
    j = jax.block_until_ready(j)

    assert v.shape == (B, NV * layer.num_obj, 3)
    assert j.shape == (B, 21 * layer.num_obj, 3)

    # smoke check against a pure-JAX reference of the kernel math
    v_ref, j_ref = layer.reference(pose)
    v_ref = jax.block_until_ready(v_ref)
    j_ref = jax.block_until_ready(j_ref)
    assert np.allclose(np.asarray(v), np.asarray(v_ref), rtol=1e-2, atol=1e-2)
    assert np.allclose(np.asarray(j), np.asarray(j_ref), rtol=1e-2, atol=1e-2)

    print("KERNEL_OK")
</pallas_src>

<mosaic_0001>
module attributes {stable_mosaic.version = 11 : i64} {
  func.func @_mano_lbs_kernel(%arg0: i32, %arg1: memref<1x24x144xbf16, #tpu.memory_space<vmem>>, %arg2: memref<1x4x24x16xf32, #tpu.memory_space<vmem>>, %arg3: memref<1x144x2688xbf16, #tpu.memory_space<vmem>>, %arg4: memref<1x1x2688xf32, #tpu.memory_space<vmem>>, %arg5: memref<1x16x896xf32, #tpu.memory_space<vmem>>, %arg6: memref<1x24x896xf32, #tpu.memory_space<vmem>>) attributes {dimension_semantics = [#tpu.dimension_semantics<parallel>], iteration_bounds = array<i64: 2>, scalar_prefetch = 0 : i64, scratch_operands = 0 : i64, tpu.core_type = #tpu.core_type<tc>, window_params = [{transform_indices = @transform_0, window_bounds = array<i64: 1, 24, 144>}, {transform_indices = @transform_1, window_bounds = array<i64: 1, 4, 24, 16>}, {transform_indices = @transform_2, window_bounds = array<i64: 1, 144, 2688>}, {transform_indices = @transform_3, window_bounds = array<i64: 1, 1, 2688>}, {transform_indices = @transform_4, window_bounds = array<i64: 1, 16, 896>}, {transform_indices = @transform_5, window_bounds = array<i64: 1, 24, 896>}]} {
    %c0 = arith.constant 0 : index
    %c0_0 = arith.constant 0 : index
    %c0_1 = arith.constant 0 : index
    %0 = vector.load %arg1[%c0, %c0_0, %c0_1] : memref<1x24x144xbf16, #tpu.memory_space<vmem>>, vector<1x24x144xbf16>
    %1 = vector.shape_cast %0 : vector<1x24x144xbf16> to vector<24x144xbf16>
    %c0_2 = arith.constant 0 : index
    %c0_3 = arith.constant 0 : index
    %c0_4 = arith.constant 0 : index
    %2 = vector.load %arg3[%c0_2, %c0_3, %c0_4] : memref<1x144x2688xbf16, #tpu.memory_space<vmem>>, vector<1x144x2688xbf16>
    %3 = vector.shape_cast %2 : vector<1x144x2688xbf16> to vector<144x2688xbf16>
    %cst = arith.constant dense<0.000000e+00> : vector<24x2688xf32>
    %4 = tpu.matmul %1, %3, %cst {dimension_numbers = #tpu.dot_dimension_numbers<[1], [0], [0], [1], [0, 0, 1, 1], [], []>} : vector<24x144xbf16>, vector<144x2688xbf16>, vector<24x2688xf32> -> vector<24x2688xf32>
    %c0_5 = arith.constant 0 : index
    %c0_6 = arith.constant 0 : index
    %c0_7 = arith.constant 0 : index
    %5 = vector.load %arg4[%c0_5, %c0_6, %c0_7] : memref<1x1x2688xf32, #tpu.memory_space<vmem>>, vector<1x1x2688xf32>
    %6 = vector.shape_cast %5 : vector<1x1x2688xf32> to vector<1x2688xf32>
    %7 = vector.broadcast %6 : vector<1x2688xf32> to vector<24x2688xf32>
    %8 = arith.addf %4, %7 : vector<24x2688xf32>
    %c0_8 = arith.constant 0 : index
    %c0_9 = arith.constant 0 : index
    %c0_10 = arith.constant 0 : index
    %9 = vector.load %arg5[%c0_8, %c0_9, %c0_10] : memref<1x16x896xf32, #tpu.memory_space<vmem>>, vector<1x16x896xf32>
    %10 = vector.shape_cast %9 : vector<1x16x896xf32> to vector<16x896xf32>
    %c0_11 = arith.constant 0 : index
    %c0_12 = arith.constant 0 : index
    %c0_13 = arith.constant 0 : index
    %c0_14 = arith.constant 0 : index
    %11 = vector.load %arg2[%c0_11, %c0_12, %c0_13, %c0_14] : memref<1x4x24x16xf32, #tpu.memory_space<vmem>>, vector<1x1x24x16xf32>
    %12 = vector.shape_cast %11 : vector<1x1x24x16xf32> to vector<24x16xf32>
    %cst_15 = arith.constant dense<0.000000e+00> : vector<24x896xf32>
    %13 = tpu.matmul %12, %10, %cst_15 {dimension_numbers = #tpu.dot_dimension_numbers<[1], [0], [0], [1], [0, 0, 1, 1], [], []>} : vector<24x16xf32>, vector<16x896xf32>, vector<24x896xf32> -> vector<24x896xf32>
    %c0_16 = arith.constant 0 : index
    %c1 = arith.constant 1 : index
    %c0_17 = arith.constant 0 : index
    %c0_18 = arith.constant 0 : index
    %14 = vector.load %arg2[%c0_16, %c1, %c0_17, %c0_18] : memref<1x4x24x16xf32, #tpu.memory_space<vmem>>, vector<1x1x24x16xf32>
    %15 = vector.shape_cast %14 : vector<1x1x24x16xf32> to vector<24x16xf32>
    %cst_19 = arith.constant dense<0.000000e+00> : vector<24x896xf32>
    %16 = tpu.matmul %15, %10, %cst_19 {dimension_numbers = #tpu.dot_dimension_numbers<[1], [0], [0], [1], [0, 0, 1, 1], [], []>} : vector<24x16xf32>, vector<16x896xf32>, vector<24x896xf32> -> vector<24x896xf32>
    %c0_20 = arith.constant 0 : index
    %c2 = arith.constant 2 : index
    %c0_21 = arith.constant 0 : index
    %c0_22 = arith.constant 0 : index
    %17 = vector.load %arg2[%c0_20, %c2, %c0_21, %c0_22] : memref<1x4x24x16xf32, #tpu.memory_space<vmem>>, vector<1x1x24x16xf32>
    %18 = vector.shape_cast %17 : vector<1x1x24x16xf32> to vector<24x16xf32>
    %cst_23 = arith.constant dense<0.000000e+00> : vector<24x896xf32>
    %19 = tpu.matmul %18, %10, %cst_23 {dimension_numbers = #tpu.dot_dimension_numbers<[1], [0], [0], [1], [0, 0, 1, 1], [], []>} : vector<24x16xf32>, vector<16x896xf32>, vector<24x896xf32> -> vector<24x896xf32>
    %c0_24 = arith.constant 0 : index
    %c3 = arith.constant 3 : index
    %c0_25 = arith.constant 0 : index
    %c0_26 = arith.constant 0 : index
    %20 = vector.load %arg2[%c0_24, %c3, %c0_25, %c0_26] : memref<1x4x24x16xf32, #tpu.memory_space<vmem>>, vector<1x1x24x16xf32>
    %21 = vector.shape_cast %20 : vector<1x1x24x16xf32> to vector<24x16xf32>
    %cst_27 = arith.constant dense<0.000000e+00> : vector<24x896xf32>
    %22 = tpu.matmul %21, %10, %cst_27 {dimension_numbers = #tpu.dot_dimension_numbers<[1], [0], [0], [1], [0, 0, 1, 1], [], []>} : vector<24x16xf32>, vector<16x896xf32>, vector<24x896xf32> -> vector<24x896xf32>
    %23 = vector.extract_strided_slice %8 {offsets = [0, 0], sizes = [24, 896], strides = [1, 1]} : vector<24x2688xf32> to vector<24x896xf32>
    %24 = arith.mulf %13, %23 : vector<24x896xf32>
    %25 = vector.extract_strided_slice %8 {offsets = [0, 896], sizes = [24, 896], strides = [1, 1]} : vector<24x2688xf32> to vector<24x896xf32>
    %26 = arith.mulf %16, %25 : vector<24x896xf32>
    %27 = arith.addf %24, %26 : vector<24x896xf32>
    %28 = vector.extract_strided_slice %8 {offsets = [0, 1792], sizes = [24, 896], strides = [1, 1]} : vector<24x2688xf32> to vector<24x896xf32>
    %29 = arith.mulf %19, %28 : vector<24x896xf32>
    %30 = arith.addf %27, %29 : vector<24x896xf32>
    %31 = arith.addf %30, %22 : vector<24x896xf32>
    %c0_28 = arith.constant 0 : index
    %c0_29 = arith.constant 0 : index
    %c0_30 = arith.constant 0 : index
    %32 = vector.load %arg6[%c0_28, %c0_29, %c0_30] : memref<1x24x896xf32, #tpu.memory_space<vmem>>, vector<1x24x896xf32>
    %33 = vector.shape_cast %32 : vector<1x24x896xf32> to vector<24x896xf32>
    %34 = vector.shape_cast %31 : vector<24x896xf32> to vector<1x24x896xf32>
    tpu.vector_store %arg6[%c0_28, %c0_29, %c0_30], %34 {strides = array<i32>} : memref<1x24x896xf32, #tpu.memory_space<vmem>>, vector<1x24x896xf32>,
    return
  }
  func.func @transform_0(%arg0: i32) -> (i32, i32, i32) {
    %c0_i32 = arith.constant 0 : i32
    %c0_i32_0 = arith.constant 0 : i32
    %c0_i32_1 = arith.constant 0 : i32
    return %arg0, %c0_i32, %c0_i32_0 : i32, i32, i32
  }
  func.func @transform_1(%arg0: i32) -> (i32, i32, i32, i32) {
    %c0_i32 = arith.constant 0 : i32
    %c0_i32_0 = arith.constant 0 : i32
    %c0_i32_1 = arith.constant 0 : i32
    %c0_i32_2 = arith.constant 0 : i32
    return %arg0, %c0_i32, %c0_i32_0, %c0_i32_1 : i32, i32, i32, i32
  }
  func.func @transform_2(%arg0: i32) -> (i32, i32, i32) {
    %c0_i32 = arith.constant 0 : i32
    %c0_i32_0 = arith.constant 0 : i32
    %c0_i32_1 = arith.constant 0 : i32
    return %arg0, %c0_i32, %c0_i32_0 : i32, i32, i32
  }
  func.func @transform_3(%arg0: i32) -> (i32, i32, i32) {
    %c0_i32 = arith.constant 0 : i32
    %c0_i32_0 = arith.constant 0 : i32
    %c0_i32_1 = arith.constant 0 : i32
    return %arg0, %c0_i32, %c0_i32_0 : i32, i32, i32
  }
  func.func @transform_4(%arg0: i32) -> (i32, i32, i32) {
    %c0_i32 = arith.constant 0 : i32
    %c0_i32_0 = arith.constant 0 : i32
    %c0_i32_1 = arith.constant 0 : i32
    return %arg0, %c0_i32, %c0_i32_0 : i32, i32, i32
  }
  func.func @transform_5(%arg0: i32) -> (i32, i32, i32) {
    %c0_i32 = arith.constant 0 : i32
    %c0_i32_0 = arith.constant 0 : i32
    %c0_i32_1 = arith.constant 0 : i32
    return %arg0, %c0_i32, %c0_i32_0 : i32, i32, i32
  }
}

</mosaic_0001>

<bundles_post_ra>
// kernel: tpu_custom_call.1
= control target key start
LH: loop header
LB: loop body
LE: loop exit
PB: predicated region body
PF: predicated region fallthrough
CT: control target
= control target key end

     0   :  { %s6168_s0 = inlined_call_operand.hbm [shape: bf16[2,24,144], index: 0, kind: input, shape index: {}]   ;;  %s6169_s1 = inlined_call_operand.vmem [shape: f32[2,4,24,16], index: 1, kind: input, shape index: {}]   ;;  %s6170_s2 = inlined_call_operand.hbm [shape: bf16[2,144,2688], index: 2, kind: input, shape index: {}]   ;;  %s6171_s3 = inlined_call_operand.hbm [shape: f32[2,1,2688], index: 3, kind: input, shape index: {}]   ;;  %s6172_s4 = inlined_call_operand.hbm [shape: f32[2,16,896], index: 4, kind: input, shape index: {}]   ;;  %s6173_s5 = inlined_call_operand.hbm [shape: f32[2,24,896], index: 5, kind: output, shape index: {}]  }
   0x1   :  { %6186 = sst [smem:[#allocation44_spill]] %s6168_s0 }
   0x2   :  { %6187 = sst [smem:[#allocation45_spill]] %s6170_s2 }
   0x3   :  { %10 = vsyncpa [#allocation3], 0 }
   0x4   :  { %12 = vsyncpa [#allocation3 + $0x1], 0 }
   0x5   :  { %13 = vsyncpa [#allocation6], 0 }
   0x6   :  { %15 = vsyncpa [#allocation6 + $0x1], 0 }
   0x7   :  { %16 = vsyncpa [#allocation9], 0 }
   0x8   :  { %18 = vsyncpa [#allocation9 + $0x1], 0 }
   0x9   :  { %19 = vsyncpa [#allocation4], 0 }
   0xa   :  { %21 = vsyncpa [#allocation4 + $0x1], 0  ;;  %s4953_s18 = smov 0   ;;  %s4955_s19 = smov 0  }
   0xb   :  { %s4957_s20 = smov 0   ;;  %s4959_s21 = smov 0  }
   0xc LB: > { %6188 = sst [smem:[#allocation15_spill]] %s4892_s18  ;;  %s4974_s22 = sadd.s32 4294967295, %s4904_s21   ;;  %s4904_s21 = sphi %s4959_s21, %s6260_s21   ;;  %s4900_s20 = sphi %s4957_s20, %s6262_s20   ;;  %s4896_s19 = sphi %s4955_s19, %s6264_s19   ;;  %s4892_s18 = sphi %s4953_s18, %s6263_s18  }
   0xd   : > { %6189 = sst [smem:[#allocation16_spill]] %s4900_s20  ;;  %s3918_s23 = sadd.s32 4294967294, %s4904_s21  }
   0xe   : > { %s4978_s24 = sadd.s32 1, %s4904_s21   ;;  %s34_s25 = sadd.s32 1, %s4900_s20 }
   0xf   : > { %6190 = sst [smem:[#allocation17_spill]] %s4978_s24  ;;  %s31_s26 = ssub.s32 %s4904_s21, %s4978_s24 }
  0x10   : > { %p41_p0 = scmp.ne.s32.totalorder %s4900_s20, %s4896_s19  ;;  %p32_p1 = scmp.eq.s32.totalorder %s31_s26, 0 }
  0x11   : > { %p42_p2 = scmp.eq.s32.totalorder %s4904_s21, 0  ;;  %p47_p3 = scmp.ne.s32.totalorder %s4896_s19, %s4892_s18 }
  0x12   : > { %p48_p4 = scmp.eq.s32.totalorder %s4974_s22, 0  ;;  %p175_p7 = scmp.eq.s32.totalorder %s4974_s22, 1 }
  0x13   : > { %s4990_s27 = scalar_select %p32_p1, %s4900_s20, %s34_s25  }
  0x14   : > { %p43_p5 = por %p42_p2, %p41_p0  ;;  %p4992_p6 = por %p48_p4, %p47_p3 }
  0x15   : > { %6191 = sst [smem:[#allocation18_spill]] %s4990_s27  ;;  %p181_p8 = scmp.eq.s32.totalorder %s3918_s23, 1 }
  0x16   : > { %s6192_s28 = scalar_select %p4992_p6, 1, 0 }
  0x17   : > { %p4378_p10 = scmp.lt.s32.totalorder %s4904_s21, 2  ;;  %p4999_p11 = por %p175_p7, %p41_p0 }
  0x18   : > { %p5003_p12 = por %p181_p8, %p47_p3  ;;  %s5008_s6 = sand.u32 1, %s4900_s20  }
  0x19   : > { %s6193_s29 = scalar_select %p4999_p11, 1, 0 }
  0x1a   : > { %s6194_s30 = scalar_select %p5003_p12, 1, 0 }
  0x1b   : > { %p5010_p13 = pnand %p4378_p10, %p43_p5  ;;  %s230_s8 = sand.u32 1, %s4904_s21  }
  0x1c   : > { %6195 = sst [smem:[#allocation19_spill]] %s6194_s30  ;;  %s4338_s9 = smul.u32 1512, %s5008_s6 }
  0x1d   : > { %s6196_s7 = scalar_select %p5010_p13, 1, 0 }
  0x1e   : > { %s4339_s10 = smul.u32 24192, %s4904_s21  ;;  %s234_s11 = scalar_lea.vmem [#allocation5], %s4338_s9 }
  0x1f   : > { %s241_s12 = sshll.u32 %s234_s11, 4  ;;  %s6197_s2 = sld [smem:[#allocation45_spill]]  ;;  %s5022_s12 = int_to_ptr.vmem [resolvable:$true] %s241_s12 }
  0x20   : > { %s5025_s16 = scalar_lea.sflag [#allocation6], %s230_s8  ;;  %p5031_p2 = pneg %p5010_p13 }
  0x25   : > { %s5020_s15 = scalar_lea.hbm %s6197_s2, %s4339_s10  ;;  %s4715_s9 = scalar_lea.hbm %s6197_s2, 48384 }
  0x26   : > { %s4710_s17 = scalar_lea.hbm %s5020_s15, 24192  ;;  %p4716_p5 = scmp.lt.u32.totalorder %s5020_s15, %s6197_s2 }
  0x27   : > { %p4711_p1 = scmp.ne.s32.totalorder %s5020_s15, %s4710_s17  ;;  %p4717_p7 = scmp.lt.u32.totalorder %s4715_s9, %s4710_s17 }
  0x28   : > { %p4719_p10 = scmp.lt.u32.totalorder %s4710_s17, %s5020_s15 }
  0x29   : > { %p4713_p3 = pnand %p5031_p2, %p4711_p1  ;;  %p4718_p8 = por %p4717_p7, %p4716_p5 }
  0x2b   : > { %p4714_p4 = pneg %p4713_p3  ;;  %p4720_p9 = por %p4719_p10, %p4718_p8 }
  0x2d   : > { %p4721_p0 = pnand %p4720_p9, %p4714_p4 }
  0x2f   : > { %4724 = shalt.err (!%p4721_p0)
}
  0x30   : > { %s4725_s8 = scalar_lea.vmem %s5022_s12, 24192  ;;  %s4906_s13 = smov [#allocation5]  }
  0x31   : > { %p4726_p1 = scmp.ne.s32.totalorder %s5022_s12, %s4725_s8  ;;  %s4730_s14 = sshll.u32 %s4906_s13, 4  ;;  %s4731_s14 = int_to_ptr.vmem [resolvable:$false] %s4730_s14 }
  0x32   : > { %s4732_s25 = scalar_lea.vmem %s4731_s14, 48384  ;;  %p4733_p11 = scmp.lt.s32.totalorder %s5022_s12, %s4731_s14 }
  0x33   : > { %p4728_p3 = pnand %p4726_p1, %p5031_p2  ;;  %p4734_p6 = scmp.lt.s32.totalorder %s4732_s25, %s4725_s8 }
  0x35   : > { %p4729_p12 = pneg %p4728_p3  ;;  %p4735_p5 = por %p4734_p6, %p4733_p11 }
  0x37   : > { %p4736_p7 = pnand %p4735_p5, %p4729_p12 }
  0x39   : > { %4739 = shalt.err (!%p4736_p7)
}
  0x3a   : > { %s4907_s17 = smov 1344   ;;  %s4908_s26 = smov 84  }
  0x3b   : > { %4367 = dma.hbm_to_vmem [thread:$0]  (!%p5010_p13), %s5020_s15, 24192, %s5022_s12, %s5025_s16, %s4907_s17, %s4907_s17, %s4908_s26  }
  0x3c   : > { %p289_p9 = scmp.lt.s32.totalorder %s4904_s21, 3  ;;  %s4336_s9 = smul.u32 24, %s5008_s6 }
  0x3d   : > { %p6199_p6 = scmp.ge.s32.totalorder %s4904_s21, 1  ;;  %s4337_s11 = smul.u32 384, %s4904_s21 }
  0x3e   : > { %s6201_s0 = sld [smem:[#allocation44_spill]]  ;;  %s205_s25 = scalar_lea.vmem [#allocation2], %s4336_s9 }
  0x3f   : > { %p5059_p11 = pnand %p6199_p6, %p289_p9  ;;  %s212_s2 = sshll.u32 %s205_s25, 4  ;;  %s5069_s2 = int_to_ptr.vmem [resolvable:$true] %s212_s2 }
  0x40   : > { %s4340_s12 = smul.u32 21, %s5008_s6  ;;  %s202_s15 = scalar_lea.sflag [#allocation3], %s5008_s6 }
  0x41   : > { %s6200_s10 = scalar_select %p5059_p11, 1, 0 }
  0x44   : > { %s5067_s14 = scalar_lea.hbm %s6201_s0, %s4337_s11  ;;  %s4745_s11 = scalar_lea.hbm %s6201_s0, 768 }
  0x45   : > { %s4740_s17 = scalar_lea.hbm %s5067_s14, 384  ;;  %p4746_p8 = scmp.lt.u32.totalorder %s5067_s14, %s6201_s0 }
  0x46   : > { %p4741_p12 = scmp.ne.s32.totalorder %s5067_s14, %s4740_s17  ;;  %p4747_p10 = scmp.lt.u32.totalorder %s4745_s11, %s4740_s17 }
  0x47   : > { %p4749_p3 = scmp.lt.u32.totalorder %s4740_s17, %s5067_s14 }
  0x48   : > { %p4743_p0 = pnand %p4741_p12, %p5031_p2  ;;  %p4748_p1 = por %p4747_p10, %p4746_p8 }
  0x4a   : > { %p4744_p4 = pneg %p4743_p0  ;;  %p4750_p5 = por %p4749_p3, %p4748_p1 }
  0x4c   : > { %p4751_p7 = pnand %p4750_p5, %p4744_p4 }
  0x4e   : > { %4754 = shalt.err (!%p4751_p7)
}
  0x4f   : > { %s4755_s9 = scalar_lea.vmem %s5069_s2, 384  ;;  %s4909_s27 = smov [#allocation2]  }
  0x50   : > { %p4756_p9 = scmp.ne.s32.totalorder %s5069_s2, %s4755_s9  ;;  %s4760_s25 = sshll.u32 %s4909_s27, 4  ;;  %s4761_s25 = int_to_ptr.vmem [resolvable:$false] %s4760_s25 }
  0x51   : > { %s4762_s26 = scalar_lea.vmem %s4761_s25, 768  ;;  %p4763_p0 = scmp.lt.s32.totalorder %s5069_s2, %s4761_s25 }
  0x52   : > { %p4758_p6 = pnand %p4756_p9, %p5031_p2  ;;  %p4764_p11 = scmp.lt.s32.totalorder %s4762_s26, %s4755_s9 }
  0x54   : > { %p4759_p12 = pneg %p4758_p6  ;;  %p4765_p8 = por %p4764_p11, %p4763_p0 }
  0x56   : > { %p4766_p10 = pnand %p4765_p8, %p4759_p12 }
  0x58   : > { %4769 = shalt.err (!%p4766_p10)
}
  0x59   : > { %s4910_s17 = smov 128   ;;  %s4911_s11 = smov 8  }
  0x5a   : > { %4364 = dma.hbm_to_vmem [thread:$0]  (!%p5010_p13), %s5067_s14, 384, %s5069_s2, %s202_s15, %s4910_s17, %s4910_s17, %s4911_s11  }
  0x5b   : > { %s4341_s8 = smul.u32 336, %s4904_s21  ;;  %s255_s13 = scalar_lea.vmem [#allocation7], %s4340_s12 }
  0x5c   : > { %s263_s27 = sshll.u32 %s255_s13, 4  ;;  %s4775_s30 = scalar_lea.hbm %s6171_s3, 672  ;;  %s264_s27 = int_to_ptr.vmem [resolvable:$true] %s263_s27 }
  0x5d   : > { %s261_s26 = scalar_lea.hbm %s6171_s3, %s4341_s8 }
  0x5e   : > { %s4770_s0 = scalar_lea.hbm %s261_s26, 336  ;;  %p4776_p3 = scmp.lt.u32.totalorder %s261_s26, %s6171_s3 }
  0x5f   : > { %p4771_p11 = scmp.ne.s32.totalorder %s261_s26, %s4770_s0  ;;  %p4777_p5 = scmp.lt.u32.totalorder %s4775_s30, %s4770_s0 }
  0x60   : > { %p4779_p9 = scmp.lt.u32.totalorder %s4770_s0, %s261_s26 }
  0x61   : > { %p4773_p4 = pnand %p4771_p11, %p5031_p2  ;;  %p4778_p7 = por %p4777_p5, %p4776_p3 }
  0x63   : > { %p4774_p1 = pneg %p4773_p4  ;;  %p4780_p6 = por %p4779_p9, %p4778_p7 }
  0x65   : > { %p4781_p12 = pnand %p4780_p6, %p4774_p1 }
  0x67   : > { %4784 = shalt.err (!%p4781_p12)
}
  0x68   : > { %s4785_s14 = scalar_lea.vmem %s264_s27, 336  ;;  %s4912_s12 = smov [#allocation7]  }
  0x69   : > { %p4786_p0 = scmp.ne.s32.totalorder %s264_s27, %s4785_s14  ;;  %s4790_s15 = sshll.u32 %s4912_s12, 4  ;;  %s4791_s15 = int_to_ptr.vmem [resolvable:$false] %s4790_s15 }
  0x6a   : > { %s4792_s20 = scalar_lea.vmem %s4791_s15, 672  ;;  %p4793_p11 = scmp.lt.s32.totalorder %s264_s27, %s4791_s15 }
  0x6b   : > { %p4788_p8 = pnand %p4786_p0, %p5031_p2  ;;  %p4794_p4 = scmp.lt.s32.totalorder %s4792_s20, %s4785_s14 }
  0x6d   : > { %p4789_p10 = pneg %p4788_p8  ;;  %p4795_p13 = por %p4794_p4, %p4793_p11 }
  0x6f   : > { %p4796_p3 = pnand %p4795_p13, %p4789_p10 }
  0x71   : > { %4799 = shalt.err (!%p4796_p3)
}
  0x72   : > { %p6202_p5 = scmp.ne.s32.totalorder %s6196_s7, 0  ;;  %s4342_s0 = smul.u32 112, %s5008_s6 }
  0x73   : > { %s4343_s18 = smul.u32 1792, %s4904_s21  ;;  %s271_s13 = scalar_lea.sflag [#allocation9], %s5008_s6 }
  0x74   : > { %4370 = dma.hbm_to_vmem [thread:$0]  (!%p6202_p5), %s261_s26, 336, %s264_s27, %s5025_s16  }
  0x75   : > { %s5120_s17 = scalar_lea.hbm %s6172_s4, %s4343_s18  ;;  %s274_s11 = scalar_lea.vmem [#allocation8], %s4342_s0 }
  0x76   : > { %s281_s8 = sshll.u32 %s274_s11, 4  ;;  %s4800_s9 = scalar_lea.hbm %s5120_s17, 1792  ;;  %s5122_s8 = int_to_ptr.vmem [resolvable:$true] %s281_s8 }
  0x77   : > { %p4801_p13 = scmp.ne.s32.totalorder %s5120_s17, %s4800_s9  ;;  %s4805_s25 = scalar_lea.hbm %s6172_s4, 3584 }
  0x78   : > { %p4806_p9 = scmp.lt.u32.totalorder %s5120_s17, %s6172_s4  ;;  %p4807_p6 = scmp.lt.u32.totalorder %s4805_s25, %s4800_s9 }
  0x79   : > { %p4803_p1 = pnand %p4801_p13, %p5031_p2  ;;  %p4809_p0 = scmp.lt.u32.totalorder %s4800_s9, %s5120_s17 }
  0x7a   : > { %p4808_p12 = por %p4807_p6, %p4806_p9 }
  0x7b   : > { %p4804_p7 = pneg %p4803_p1 }
  0x7c   : > { %p4810_p8 = por %p4809_p0, %p4808_p12 }
  0x7e   : > { %p4811_p10 = pnand %p4810_p8, %p4804_p7 }
  0x80   : > { %4814 = shalt.err (!%p4811_p10)
}
  0x81   : > { %s4815_s14 = scalar_lea.vmem %s5122_s8, 1792  ;;  %s4913_s12 = smov [#allocation8]  }
  0x82   : > { %p4816_p11 = scmp.ne.s32.totalorder %s5122_s8, %s4815_s14  ;;  %s4820_s15 = sshll.u32 %s4913_s12, 4  ;;  %s4821_s15 = int_to_ptr.vmem [resolvable:$false] %s4820_s15 }
  0x83   : > { %s4822_s20 = scalar_lea.vmem %s4821_s15, 3584  ;;  %p4823_p13 = scmp.lt.s32.totalorder %s5122_s8, %s4821_s15 }
  0x84   : > { %p4818_p4 = pnand %p4816_p11, %p5031_p2  ;;  %p4824_p1 = scmp.lt.s32.totalorder %s4822_s20, %s4815_s14 }
  0x86   : > { %p4819_p3 = pneg %p4818_p4  ;;  %p4825_p9 = por %p4824_p1, %p4823_p13 }
  0x88   : > { %p4826_p6 = pnand %p4825_p9, %p4819_p3 }
  0x8a   : > { %4829 = shalt.err (!%p4826_p6)
}
  0x8b   : > { %s4914_s0 = smov 896   ;;  %s4915_s18 = smov 56  }
  0x8c   : > { %4373 = dma.hbm_to_vmem [thread:$0]  (!%p6202_p5), %s5120_s17, 1792, %s5122_s8, %s271_s13, %s4914_s0, %s4914_s0, %s4915_s18  }
  0x8d   : > { %p6203_p2 = scmp.ne.s32.totalorder %s6200_s10, 0 }
  0x8f   : > { %293 = sbr.rel (%p6203_p2) target bundleno = 703 (0x2bf), region = 40 }
  0x96   : > { %s5151_s23 = sand.u32 1, %s4896_s19   ;;  %p6204_p7 = scmp.ne.s32.totalorder %s6192_s28, 0 }
  0x97   : > { %s4344_s24 = smul.u32 24, %s5151_s23  ;;  %s296_s30 = scalar_lea.sflag [#allocation3], %s5151_s23 }
  0x99   : > { %s5155_s11 = scalar_lea.vmem [#allocation2], %s4344_s24 }
  0x9a   : > { %4875 = dma.done.wait (%p6204_p7), %s296_s30, 384  }
  0x9b   : > { %4877 = vsyncadd (%p6204_p7), %s296_s30, 4294966912  ;;  %s304_s6 = sand.u32 1, %s4974_s22   ;;  %s4345_s7 = smul.u32 1512, %s5151_s23 }
  0x9c   : > { %s305_s10 = scalar_lea.sflag [#allocation6], %s304_s6 }
  0x9d   : > { %s5163_s17 = scalar_lea.vmem [#allocation5], %s4345_s7 }
  0x9e   : > { %4879 = dma.done.wait (%p6204_p7), %s305_s10, 24528  }
  0x9f   : > { %4881 = vsyncadd (%p6204_p7), %s305_s10, 4294942768  ;;  %s4346_s8 = smul.u32 21, %s5151_s23  ;;  %s323_s16 = scalar_lea.sflag [#allocation9], %s5151_s23 }
  0xa0   : > { %s4347_s13 = smul.u32 112, %s5151_s23 }
  0xa1   : > { %s5171_s9 = scalar_lea.vmem [#allocation7], %s4346_s8 }
  0xa2   : > { %s5174_s27 = scalar_lea.vmem [#allocation8], %s4347_s13 }
  0xa3   : > { %4883 = dma.done.wait (%p6204_p7), %s323_s16, 1792  }
  0xa4   : > { %4885 = vsyncadd (%p6204_p7), %s323_s16, 4294965504  ;;  %v4424_v0 = vld [vmem:[%s5163_s17 + $0x4] ss:$84 sps:$4 sm:$0xff]   ;;  %v4426_v1 = vld [vmem:[%s5163_s17 + $0xc] ss:$84 sps:$4 sm:$0xff]   ;;  %vm1660_vm0 = vcmask 130048  }
  0xa5   : > { %1667 = vmatprep.subr.bf16.mxu0 %v4424_v0  ;;  %v4428_v2 = vld [vmem:[%s5163_s17] ss:$84 sps:$4 sm:$0xff]   ;;  %v4429_v3 = vld [vmem:[%s5163_s17 + $0x8] ss:$84 sps:$4 sm:$0xff]   ;;  %1718 = vmatprep.subr.bf16.mxu1 %v4426_v1  ;;  %v4435_v7 = vld [vmem:[%s5163_s17 + $0xb0] ss:$84 sps:$4 sm:$0xff]  }
  0xa6   : > { %v4430_v4 = vld [vmem:[%s5163_s17 + $0xac] ss:$84 sps:$4 sm:$0xff]   ;;  %1668 = vmatpush1.bf16.msra.mxu0 %v4428_v2  ;;  %1719 = vmatpush1.bf16.msra.mxu1 %v4429_v3  ;;  %v4432_v5 = vld [vmem:[%s5163_s17 + $0xb4] ss:$84 sps:$4 sm:$0xff]   ;;  %v4438_v9 = vld [vmem:[%s5163_s17 + $0x15c] ss:$84 sps:$4 sm:$0xff]  }
  0xa7   : > { %v4434_v6 = vld [vmem:[%s5163_s17 + $0xa8] ss:$84 sps:$4 sm:$0xff]   ;;  %1669 = vmatprep.subr.bf16.mxu0 %v4430_v4  ;;  %1720 = vmatprep.subr.bf16.mxu1 %v4432_v5  ;;  %v4440_v10 = vld [vmem:[%s5163_s17 + $0x150] ss:$84 sps:$4 sm:$0xff]   ;;  %v4441_v11 = vld [vmem:[%s5163_s17 + $0x158] ss:$84 sps:$4 sm:$0xff]  }
  0xa8   : > { %v4436_v8 = vld [vmem:[%s5163_s17 + $0x154] ss:$84 sps:$4 sm:$0xff]   ;;  %v4442_v12 = vld [vmem:[%s5163_s17 + $0x1fc] ss:$84 sps:$4 sm:$0xff]   ;;  %v4444_v13 = vld [vmem:[%s5163_s17 + $0x204] ss:$84 sps:$4 sm:$0xff]  }
  0xa9   : > { %v4446_v14 = vld [vmem:[%s5163_s17 + $0x1f8] ss:$84 sps:$4 sm:$0xff]   ;;  %v4447_v15 = vld [vmem:[%s5163_s17 + $0x200] ss:$84 sps:$4 sm:$0xff]   ;;  %v4453_v19 = vld [vmem:[%s5163_s17 + $0x2a8] ss:$84 sps:$4 sm:$0xff]  }
  0xaa   : > { %1670 = vmatpush1.bf16.msra.mxu0 %v4434_v6  ;;  %1721 = vmatpush1.bf16.msra.mxu1 %v4435_v7  ;;  %v4448_v16 = vld [vmem:[%s5163_s17 + $0x2a4] ss:$84 sps:$4 sm:$0xff]   ;;  %v4450_v17 = vld [vmem:[%s5163_s17 + $0x2ac] ss:$84 sps:$4 sm:$0xff]   ;;  %v4456_v21 = vld [vmem:[%s5163_s17 + $0x354] ss:$84 sps:$4 sm:$0xff]  }
  0xab   : > { %1671 = vmatprep.subr.bf16.mxu0 %v4436_v8  ;;  %1722 = vmatprep.subr.bf16.mxu1 %v4438_v9  ;;  %v4452_v18 = vld [vmem:[%s5163_s17 + $0x2a0] ss:$84 sps:$4 sm:$0xff]   ;;  %v4458_v22 = vld [vmem:[%s5163_s17 + $0x348] ss:$84 sps:$4 sm:$0xff]   ;;  %v4459_v23 = vld [vmem:[%s5163_s17 + $0x350] ss:$84 sps:$4 sm:$0xff]  }
  0xac   : > { %v4454_v20 = vld [vmem:[%s5163_s17 + $0x34c] ss:$84 sps:$4 sm:$0xff]   ;;  %v4460_v24 = vld [vmem:[%s5163_s17 + $0x3f4] ss:$84 sps:$4 sm:$0xff]   ;;  %v4462_v25 = vld [vmem:[%s5163_s17 + $0x3fc] ss:$84 sps:$4 sm:$0xff]  }
  0xad   : > { %v4464_v26 = vld [vmem:[%s5163_s17 + $0x3f0] ss:$84 sps:$4 sm:$0xff]   ;;  %v4465_v27 = vld [vmem:[%s5163_s17 + $0x3f8] ss:$84 sps:$4 sm:$0xff]   ;;  %v4471_v32 = vld [vmem:[%s5163_s17 + $0x4a0] ss:$84 sps:$4 sm:$0xff]  }
  0xae   : > { %1672 = vmatpush1.bf16.msra.mxu0 %v4440_v10  ;;  %1723 = vmatpush1.bf16.msra.mxu1 %v4441_v11  ;;  %v4466_v28 = vld [vmem:[%s5163_s17 + $0x49c] ss:$84 sps:$4 sm:$0xff]   ;;  %v4468_v30 = vld [vmem:[%s5163_s17 + $0x4a4] ss:$84 sps:$4 sm:$0xff]   ;;  %v4474_v34 = vld [vmem:[%s5163_s17 + $0x54c] ss:$84 sps:$4 sm:$0xff]  }
  0xaf   : > { %1673 = vmatprep.subr.bf16.mxu0 %v4442_v12  ;;  %1724 = vmatprep.subr.bf16.mxu1 %v4444_v13  ;;  %v5210_v29 = vld [vmem:[%s5155_s11 + $0x4] ss:$8 sps:$4 sm:$0xff]   ;;  %v5226_v39 = vld [vmem:[%s5155_s11] ss:$8 sps:$4 sm:$0xff]   ;;  %v381_v50 = vld [vmem:[%s5155_s11 + $0x10] sm:$0xff]  ;;  %p373_p5 = scmp.lt.s32.totalorder %s4974_s22, 1 }
  0xb0   : > { %4122 = vmatprep.mubr.msk.bf16.mxu1 %vm1660_vm0, %v5210_v29  ;;  %4120 = vmatprep.mubr.msk.bf16.mxu0 %vm1660_vm0, %v5210_v29  ;;  %v4470_v31 = vld [vmem:[%s5163_s17 + $0x498] ss:$84 sps:$4 sm:$0xff]   ;;  %v4476_v35 = vld [vmem:[%s5163_s17 + $0x540] ss:$84 sps:$4 sm:$0xff]   ;;  %v4477_v36 = vld [vmem:[%s5163_s17 + $0x548] ss:$84 sps:$4 sm:$0xff]   ;;  %v5243_v53 = vcombine.high %v381_v50, %v381_v50  ;;  %v5245_v54 = vcombine.low %v381_v50, %v381_v50 }
  0xb1   : > { %v4472_v33 = vld [vmem:[%s5163_s17 + $0x544] ss:$84 sps:$4 sm:$0xff]   ;;  %v4483_v37 = vld [vmem:[%s5163_s17 + $0x14] ss:$84 sps:$4 sm:$0xff]   ;;  %v4486_v38 = vld [vmem:[%s5163_s17 + $0x1c] ss:$84 sps:$4 sm:$0xff]  }
  0xb2   : > { %1674 = vmatpush1.bf16.msra.mxu0 %v4446_v14  ;;  %1725 = vmatpush1.bf16.msra.mxu1 %v4447_v15  ;;  %v4481_v40 = vld [vmem:[%s5163_s17 + $0x10] ss:$84 sps:$4 sm:$0xff]   ;;  %v4484_v41 = vld [vmem:[%s5163_s17 + $0x18] ss:$84 sps:$4 sm:$0xff]   ;;  %v4490_v45 = vld [vmem:[%s5163_s17 + $0xc0] ss:$84 sps:$4 sm:$0xff]  }
  0xb3   : > { %1675 = vmatprep.subr.bf16.mxu0 %v4448_v16  ;;  %1726 = vmatprep.subr.bf16.mxu1 %v4450_v17  ;;  %v4489_v42 = vld [vmem:[%s5163_s17 + $0xbc] ss:$84 sps:$4 sm:$0xff]   ;;  %v4492_v43 = vld [vmem:[%s5163_s17 + $0xc4] ss:$84 sps:$4 sm:$0xff]   ;;  %v4498_v47 = vld [vmem:[%s5163_s17 + $0x16c] ss:$84 sps:$4 sm:$0xff]  }
  0xb4   : > { %v4487_v44 = vld [vmem:[%s5163_s17 + $0xb8] ss:$84 sps:$4 sm:$0xff]   ;;  %v4493_v48 = vld [vmem:[%s5163_s17 + $0x160] ss:$84 sps:$4 sm:$0xff]   ;;  %v4496_v49 = vld [vmem:[%s5163_s17 + $0x168] ss:$84 sps:$4 sm:$0xff]  }
  0xb5   : > { %v4495_v46 = vld [vmem:[%s5163_s17 + $0x164] ss:$84 sps:$4 sm:$0xff]   ;;  %v4501_v51 = vld [vmem:[%s5163_s17 + $0x20c] ss:$84 sps:$4 sm:$0xff]   ;;  %v4504_v52 = vld [vmem:[%s5163_s17 + $0x214] ss:$84 sps:$4 sm:$0xff]  }
  0xb6   : > { %1676 = vmatpush1.bf16.msra.mxu0 %v4452_v18  ;;  %1727 = vmatpush1.bf16.msra.mxu1 %v4453_v19  ;;  %v4499_v55 = vld [vmem:[%s5163_s17 + $0x208] ss:$84 sps:$4 sm:$0xff]   ;;  %v4502_v56 = vld [vmem:[%s5163_s17 + $0x210] ss:$84 sps:$4 sm:$0xff]   ;;  %v4508_v60 = vld [vmem:[%s5163_s17 + $0x2b8] ss:$84 sps:$4 sm:$0xff]  }
  0xb7   : > { %1677 = vmatprep.subr.bf16.mxu0 %v4454_v20  ;;  %1728 = vmatprep.subr.bf16.mxu1 %v4456_v21  ;;  %v4507_v57 = vld [vmem:[%s5163_s17 + $0x2b4] ss:$84 sps:$4 sm:$0xff]   ;;  %v4510_v58 = vld [vmem:[%s5163_s17 + $0x2bc] ss:$84 sps:$4 sm:$0xff]   ;;  %v4516_v62 = vld [vmem:[%s5163_s17 + $0x364] ss:$84 sps:$4 sm:$0xff]  }
  0xb8   : > { %v4505_v59 = vld [vmem:[%s5163_s17 + $0x2b0] ss:$84 sps:$4 sm:$0xff]   ;;  %v4511_v63 = vld [vmem:[%s5163_s17 + $0x358] ss:$84 sps:$4 sm:$0xff]   ;;  %v4514_v0 = vld [vmem:[%s5163_s17 + $0x360] ss:$84 sps:$4 sm:$0xff]  }
  0xb9   : > { %v4513_v61 = vld [vmem:[%s5163_s17 + $0x35c] ss:$84 sps:$4 sm:$0xff]   ;;  %v4519_v1 = vld [vmem:[%s5163_s17 + $0x404] ss:$84 sps:$4 sm:$0xff]   ;;  %v4522_v2 = vld [vmem:[%s5163_s17 + $0x40c] ss:$84 sps:$4 sm:$0xff]  }
  0xba   : > { %1678 = vmatpush1.bf16.msra.mxu0 %v4458_v22  ;;  %1729 = vmatpush1.bf16.msra.mxu1 %v4459_v23  ;;  %v4517_v3 = vld [vmem:[%s5163_s17 + $0x400] ss:$84 sps:$4 sm:$0xff]   ;;  %v4520_v4 = vld [vmem:[%s5163_s17 + $0x408] ss:$84 sps:$4 sm:$0xff]   ;;  %v4528_v8 = vld [vmem:[%s5163_s17 + $0x4b0] ss:$84 sps:$4 sm:$0xff]  }
  0xbb   : > { %1679 = vmatprep.subr.bf16.mxu0 %v4460_v24  ;;  %1730 = vmatprep.subr.bf16.mxu1 %v4462_v25  ;;  %v4527_v5 = vld [vmem:[%s5163_s17 + $0x4ac] ss:$84 sps:$4 sm:$0xff]   ;;  %v4530_v6 = vld [vmem:[%s5163_s17 + $0x4b4] ss:$84 sps:$4 sm:$0xff]   ;;  %v4536_v10 = vld [vmem:[%s5163_s17 + $0x55c] ss:$84 sps:$4 sm:$0xff]  }
  0xbc   : > { %v4525_v7 = vld [vmem:[%s5163_s17 + $0x4a8] ss:$84 sps:$4 sm:$0xff]   ;;  %v4531_v11 = vld [vmem:[%s5163_s17 + $0x550] ss:$84 sps:$4 sm:$0xff]   ;;  %v4534_v12 = vld [vmem:[%s5163_s17 + $0x558] ss:$84 sps:$4 sm:$0xff]  }
  0xbd   : > { %v4533_v9 = vld [vmem:[%s5163_s17 + $0x554] ss:$84 sps:$4 sm:$0xff]   ;;  %v4539_v13 = vld [vmem:[%s5163_s17 + $0x24] ss:$84 sps:$4 sm:$0xff]   ;;  %v4542_v14 = vld [vmem:[%s5163_s17 + $0x2c] ss:$84 sps:$4 sm:$0xff]  }
  0xbe   : > { %1680 = vmatpush1.bf16.msra.mxu0 %v4464_v26  ;;  %1731 = vmatpush1.bf16.msra.mxu1 %v4465_v27  ;;  %v4537_v15 = vld [vmem:[%s5163_s17 + $0x20] ss:$84 sps:$4 sm:$0xff]   ;;  %v4540_v16 = vld [vmem:[%s5163_s17 + $0x28] ss:$84 sps:$4 sm:$0xff]   ;;  %v4546_v20 = vld [vmem:[%s5163_s17 + $0xd0] ss:$84 sps:$4 sm:$0xff]  }
  0xbf   : > { %1681 = vmatprep.subr.bf16.mxu0 %v4466_v28  ;;  %1732 = vmatprep.subr.bf16.mxu1 %v4468_v30  ;;  %v4545_v17 = vld [vmem:[%s5163_s17 + $0xcc] ss:$84 sps:$4 sm:$0xff]   ;;  %v4548_v18 = vld [vmem:[%s5163_s17 + $0xd4] ss:$84 sps:$4 sm:$0xff]   ;;  %v4554_v22 = vld [vmem:[%s5163_s17 + $0x17c] ss:$84 sps:$4 sm:$0xff]  }
  0xc0   : > { %v4543_v19 = vld [vmem:[%s5163_s17 + $0xc8] ss:$84 sps:$4 sm:$0xff]   ;;  %v4549_v23 = vld [vmem:[%s5163_s17 + $0x170] ss:$84 sps:$4 sm:$0xff]   ;;  %v4552_v24 = vld [vmem:[%s5163_s17 + $0x178] ss:$84 sps:$4 sm:$0xff]  }
  0xc1   : > { %v4551_v21 = vld [vmem:[%s5163_s17 + $0x174] ss:$84 sps:$4 sm:$0xff]   ;;  %v4557_v25 = vld [vmem:[%s5163_s17 + $0x21c] ss:$84 sps:$4 sm:$0xff]   ;;  %v4560_v26 = vld [vmem:[%s5163_s17 + $0x224] ss:$84 sps:$4 sm:$0xff]  }
  0xc2   : > { %1682 = vmatpush1.bf16.msra.mxu0 %v4470_v31  ;;  %1733 = vmatpush1.bf16.msra.mxu1 %v4471_v32  ;;  %v4555_v27 = vld [vmem:[%s5163_s17 + $0x218] ss:$84 sps:$4 sm:$0xff]   ;;  %v4558_v28 = vld [vmem:[%s5163_s17 + $0x220] ss:$84 sps:$4 sm:$0xff]   ;;  %v4588_v50 = vld [vmem:[%s5163_s17 + $0x568] ss:$84 sps:$4 sm:$0xff]  }
  0xc3   : > { %1683 = vmatprep.subr.bf16.mxu0 %v4472_v33  ;;  %1734 = vmatprep.subr.bf16.mxu1 %v4474_v34  ;;  %v4563_v30 = vld [vmem:[%s5163_s17 + $0x2c4] ss:$84 sps:$4 sm:$0xff]   ;;  %v4566_v31 = vld [vmem:[%s5163_s17 + $0x2cc] ss:$84 sps:$4 sm:$0xff]   ;;  %v4564_v33 = vld [vmem:[%s5163_s17 + $0x2c8] ss:$84 sps:$4 sm:$0xff]  }
  0xc4   : > { %v4561_v32 = vld [vmem:[%s5163_s17 + $0x2c0] ss:$84 sps:$4 sm:$0xff]   ;;  %s374_s28 = scalar_select %p373_p5, %s4974_s22, 1  ;;  %vm4919_vm1 = vmmov 0  }
  0xc5   : > { %v4569_v34 = vld [vmem:[%s5163_s17 + $0x36c] ss:$84 sps:$4 sm:$0xff]   ;;  %s4348_s12 = smul.u32 168, %s5151_s23  ;;  %p6255_p0 = scmp.ne.s32.totalorder %s6193_s29, 0 }
  0xc6   : > { %1684 = vmatpush1.bf16.msra.mxu0 %v4476_v35  ;;  %1735 = vmatpush1.bf16.msra.mxu1 %v4477_v36  ;;  %v4572_v35 = vld [vmem:[%s5163_s17 + $0x374] ss:$84 sps:$4 sm:$0xff]   ;;  %s4349_s25 = smul.u32 96, %s374_s28  ;;  %s4920_s6 = smov [#allocation10]  }
  0xc7   : > { %1769 = vmatprep.subr.bf16.mxu0 %v4483_v37  ;;  %1820 = vmatprep.subr.bf16.mxu1 %v4486_v38  ;;  %v4567_v36 = vld [vmem:[%s5163_s17 + $0x368] ss:$84 sps:$4 sm:$0xff]   ;;  %v4570_v37 = vld [vmem:[%s5163_s17 + $0x370] ss:$84 sps:$4 sm:$0xff]   ;;  %s6075_s15 = scalar_lea.vmem [#allocation10], %s4348_s12  ;;  %s4350_s20 = smul.u32 2688, %s4974_s22 }
  0xc8   : > { %v4575_v38 = vld [vmem:[%s5163_s17 + $0x414] ss:$84 sps:$4 sm:$0xff]   ;;  %s5460_s14 = scalar_lea.vmem %s6169_s1, %s4349_s25  ;;  %s3767_s0 = sshll.u32 %s6075_s15, 4  ;;  %s6122_s0 = int_to_ptr.vmem [resolvable:$true] %s3767_s0 }
  0xc9   : > { %1751 = vmatmul.mubr.bf16.vlgmr.msra.gmra.mrb[0].mxu1 %v5226_v39  ;;  %1700 = vmatmul.mubr.bf16.vlgmr.msra.gmra.mrb[0].mxu0 %v5226_v39  ;;  %s6120_s30 = scalar_lea.hbm %s6173_s5, %s4350_s20  ;;  %s3754_s22 = scalar_lea.sflag [#allocation4], %s5151_s23 }
  0xca   : > { %1770 = vmatpush1.bf16.msra.mxu0 %v4481_v40  ;;  %1821 = vmatpush1.bf16.msra.mxu1 %v4484_v41  ;;  %v4578_v40 = vld [vmem:[%s5163_s17 + $0x41c] ss:$84 sps:$4 sm:$0xff]   ;;  %s4834_s7 = sshll.u32 %s4920_s6, 4  ;;  %s4835_s7 = int_to_ptr.vmem [resolvable:$false] %s4834_s7 }
  0xcb   : > { %1771 = vmatprep.subr.bf16.mxu0 %v4489_v42  ;;  %1822 = vmatprep.subr.bf16.mxu1 %v4492_v43  ;;  %v4573_v41 = vld [vmem:[%s5163_s17 + $0x410] ss:$84 sps:$4 sm:$0xff]   ;;  %v4576_v42 = vld [vmem:[%s5163_s17 + $0x418] ss:$84 sps:$4 sm:$0xff]   ;;  %s4836_s10 = scalar_lea.vmem %s4835_s7, 5376  ;;  %p4837_p11 = scmp.lt.s32.totalorder %s6122_s0, %s4835_s7 }
  0xcc   : > { %4123 = vmatprep.mubr.msk.bf16.mxu1 %vm1660_vm0, %v5243_v53  ;;  %4121 = vmatprep.mubr.msk.bf16.mxu0 %vm1660_vm0, %v5243_v53  ;;  %v4581_v43 = vld [vmem:[%s5163_s17 + $0x4bc] ss:$84 sps:$4 sm:$0xff]  }
  0xce   : > { %1772 = vmatpush1.bf16.msra.mxu0 %v4487_v44  ;;  %1823 = vmatpush1.bf16.msra.mxu1 %v4490_v45  ;;  %v4584_v44 = vld [vmem:[%s5163_s17 + $0x4c4] ss:$84 sps:$4 sm:$0xff]  }
  0xcf   : > { %1773 = vmatprep.subr.bf16.mxu0 %v4495_v46  ;;  %1824 = vmatprep.subr.bf16.mxu1 %v4498_v47  ;;  %v4579_v45 = vld [vmem:[%s5163_s17 + $0x4b8] ss:$84 sps:$4 sm:$0xff]   ;;  %v4582_v46 = vld [vmem:[%s5163_s17 + $0x4c0] ss:$84 sps:$4 sm:$0xff]  }
  0xd0   : > { %v4587_v47 = vld [vmem:[%s5163_s17 + $0x564] ss:$84 sps:$4 sm:$0xff]  }
  0xd1   : > { %1761 = vmatmul.mubr.bf16.gmra.mrb[4].mxu1 %v5245_v54  ;;  %1710 = vmatmul.mubr.bf16.gmra.mrb[4].mxu0 %v5245_v54 }
  0xd2   : > { %1774 = vmatpush1.bf16.msra.mxu0 %v4493_v48  ;;  %1825 = vmatpush1.bf16.msra.mxu1 %v4496_v49  ;;  %v4590_v48 = vld [vmem:[%s5163_s17 + $0x56c] ss:$84 sps:$4 sm:$0xff]  }
  0xd3   : > { %1775 = vmatprep.subr.bf16.mxu0 %v4501_v51  ;;  %1826 = vmatprep.subr.bf16.mxu1 %v4504_v52  ;;  %v4585_v49 = vld [vmem:[%s5163_s17 + $0x560] ss:$84 sps:$4 sm:$0xff]   ;;  %v4596_v52 = vld [vmem:[%s5163_s17 + $0x3c] ss:$84 sps:$4 sm:$0xff]  }
  0xd4   : > { %4126 = vmatprep.mubr.msk.bf16.mxu1 %vm1660_vm0, %v5210_v29  ;;  %4124 = vmatprep.mubr.msk.bf16.mxu0 %vm1660_vm0, %v5210_v29  ;;  %v4593_v51 = vld [vmem:[%s5163_s17 + $0x34] ss:$84 sps:$4 sm:$0xff]  }
  0xd6   : > { %1776 = vmatpush1.bf16.msra.mxu0 %v4499_v55  ;;  %1827 = vmatpush1.bf16.msra.mxu1 %v4502_v56  ;;  %v4591_v55 = vld [vmem:[%s5163_s17 + $0x30] ss:$84 sps:$4 sm:$0xff]   ;;  %v4594_v56 = vld [vmem:[%s5163_s17 + $0x38] ss:$84 sps:$4 sm:$0xff]  }
  0xd7   : > { %1777 = vmatprep.subr.bf16.mxu0 %v4507_v57  ;;  %1828 = vmatprep.subr.bf16.mxu1 %v4510_v58  ;;  %v4599_v57 = vld [vmem:[%s5163_s17 + $0xdc] ss:$84 sps:$4 sm:$0xff]   ;;  %v4602_v58 = vld [vmem:[%s5163_s17 + $0xe4] ss:$84 sps:$4 sm:$0xff]  }
  0xda   : > { %1778 = vmatpush1.bf16.msra.mxu0 %v4505_v59  ;;  %1829 = vmatpush1.bf16.msra.mxu1 %v4508_v60  ;;  %v4597_v59 = vld [vmem:[%s5163_s17 + $0xd8] ss:$84 sps:$4 sm:$0xff]   ;;  %v4600_v60 = vld [vmem:[%s5163_s17 + $0xe0] ss:$84 sps:$4 sm:$0xff]  }
  0xdb   : > { %1779 = vmatprep.subr.bf16.mxu0 %v4513_v61  ;;  %1830 = vmatprep.subr.bf16.mxu1 %v4516_v62  ;;  %v4605_v61 = vld [vmem:[%s5163_s17 + $0x184] ss:$84 sps:$4 sm:$0xff]   ;;  %v4608_v62 = vld [vmem:[%s5163_s17 + $0x18c] ss:$84 sps:$4 sm:$0xff]  }
  0xde   : > { %1780 = vmatpush1.bf16.msra.mxu0 %v4511_v63  ;;  %1831 = vmatpush1.bf16.msra.mxu1 %v4514_v0  ;;  %v4603_v63 = vld [vmem:[%s5163_s17 + $0x180] ss:$84 sps:$4 sm:$0xff]   ;;  %v4606_v0 = vld [vmem:[%s5163_s17 + $0x188] ss:$84 sps:$4 sm:$0xff]  }
  0xdf   : > { %1781 = vmatprep.subr.bf16.mxu0 %v4519_v1  ;;  %1832 = vmatprep.subr.bf16.mxu1 %v4522_v2  ;;  %v4611_v1 = vld [vmem:[%s5163_s17 + $0x22c] ss:$84 sps:$4 sm:$0xff]   ;;  %v4614_v2 = vld [vmem:[%s5163_s17 + $0x234] ss:$84 sps:$4 sm:$0xff]  }
  0xe2   : > { %1782 = vmatpush1.bf16.msra.mxu0 %v4517_v3  ;;  %1833 = vmatpush1.bf16.msra.mxu1 %v4520_v4  ;;  %v4609_v3 = vld [vmem:[%s5163_s17 + $0x228] ss:$84 sps:$4 sm:$0xff]   ;;  %v4612_v4 = vld [vmem:[%s5163_s17 + $0x230] ss:$84 sps:$4 sm:$0xff]  }
  0xe3   : > { %1783 = vmatprep.subr.bf16.mxu0 %v4527_v5  ;;  %1834 = vmatprep.subr.bf16.mxu1 %v4530_v6  ;;  %v4617_v5 = vld [vmem:[%s5163_s17 + $0x2d4] ss:$84 sps:$4 sm:$0xff]   ;;  %v4620_v6 = vld [vmem:[%s5163_s17 + $0x2dc] ss:$84 sps:$4 sm:$0xff]  }
  0xe6   : > { %1784 = vmatpush1.bf16.msra.mxu0 %v4525_v7  ;;  %1835 = vmatpush1.bf16.msra.mxu1 %v4528_v8  ;;  %v4615_v7 = vld [vmem:[%s5163_s17 + $0x2d0] ss:$84 sps:$4 sm:$0xff]   ;;  %v4618_v8 = vld [vmem:[%s5163_s17 + $0x2d8] ss:$84 sps:$4 sm:$0xff]  }
  0xe7   : > { %1785 = vmatprep.subr.bf16.mxu0 %v4533_v9  ;;  %1836 = vmatprep.subr.bf16.mxu1 %v4536_v10  ;;  %v4623_v9 = vld [vmem:[%s5163_s17 + $0x37c] ss:$84 sps:$4 sm:$0xff]   ;;  %v4626_v10 = vld [vmem:[%s5163_s17 + $0x384] ss:$84 sps:$4 sm:$0xff]  }
  0xea   : > { %1786 = vmatpush1.bf16.msra.mxu0 %v4531_v11  ;;  %1837 = vmatpush1.bf16.msra.mxu1 %v4534_v12  ;;  %v4621_v11 = vld [vmem:[%s5163_s17 + $0x378] ss:$84 sps:$4 sm:$0xff]   ;;  %v4624_v12 = vld [vmem:[%s5163_s17 + $0x380] ss:$84 sps:$4 sm:$0xff]  }
  0xeb   : > { %1871 = vmatprep.subr.bf16.mxu0 %v4539_v13  ;;  %1922 = vmatprep.subr.bf16.mxu1 %v4542_v14  ;;  %v4629_v13 = vld [vmem:[%s5163_s17 + $0x424] ss:$84 sps:$4 sm:$0xff]   ;;  %v4632_v14 = vld [vmem:[%s5163_s17 + $0x42c] ss:$84 sps:$4 sm:$0xff]  }
  0xed   : > { %1853 = vmatmul.mubr.bf16.vlgmr.msra.gmra.mrb[8].mxu1 %v5226_v39  ;;  %1802 = vmatmul.mubr.bf16.vlgmr.msra.gmra.mrb[8].mxu0 %v5226_v39 }
  0xee   : > { %1872 = vmatpush1.bf16.msra.mxu0 %v4537_v15  ;;  %1923 = vmatpush1.bf16.msra.mxu1 %v4540_v16  ;;  %v4627_v15 = vld [vmem:[%s5163_s17 + $0x420] ss:$84 sps:$4 sm:$0xff]   ;;  %v4630_v16 = vld [vmem:[%s5163_s17 + $0x428] ss:$84 sps:$4 sm:$0xff]  }
  0xef   : > { %1873 = vmatprep.subr.bf16.mxu0 %v4545_v17  ;;  %1924 = vmatprep.subr.bf16.mxu1 %v4548_v18  ;;  %v4635_v17 = vld [vmem:[%s5163_s17 + $0x4cc] ss:$84 sps:$4 sm:$0xff]   ;;  %v4638_v18 = vld [vmem:[%s5163_s17 + $0x4d4] ss:$84 sps:$4 sm:$0xff]  }
  0xf0   : > { %4127 = vmatprep.mubr.msk.bf16.mxu1 %vm1660_vm0, %v5243_v53  ;;  %4125 = vmatprep.mubr.msk.bf16.mxu0 %vm1660_vm0, %v5243_v53 }
  0xf2   : > { %1874 = vmatpush1.bf16.msra.mxu0 %v4543_v19  ;;  %1925 = vmatpush1.bf16.msra.mxu1 %v4546_v20  ;;  %v4633_v19 = vld [vmem:[%s5163_s17 + $0x4c8] ss:$84 sps:$4 sm:$0xff]   ;;  %v4636_v20 = vld [vmem:[%s5163_s17 + $0x4d0] ss:$84 sps:$4 sm:$0xff]  }
  0xf3   : > { %1875 = vmatprep.subr.bf16.mxu0 %v4551_v21  ;;  %1926 = vmatprep.subr.bf16.mxu1 %v4554_v22  ;;  %v4641_v21 = vld [vmem:[%s5163_s17 + $0x574] ss:$84 sps:$4 sm:$0xff]   ;;  %v4644_v22 = vld [vmem:[%s5163_s17 + $0x57c] ss:$84 sps:$4 sm:$0xff]  }
  0xf5   : > { %1863 = vmatmul.mubr.bf16.gmra.mrb[12].mxu1 %v5245_v54  ;;  %1812 = vmatmul.mubr.bf16.gmra.mrb[12].mxu0 %v5245_v54 }
  0xf6   : > { %1876 = vmatpush1.bf16.msra.mxu0 %v4549_v23  ;;  %1927 = vmatpush1.bf16.msra.mxu1 %v4552_v24  ;;  %v4639_v23 = vld [vmem:[%s5163_s17 + $0x570] ss:$84 sps:$4 sm:$0xff]   ;;  %v4642_v24 = vld [vmem:[%s5163_s17 + $0x578] ss:$84 sps:$4 sm:$0xff]  }
  0xf7   : > { %1877 = vmatprep.subr.bf16.mxu0 %v4557_v25  ;;  %1928 = vmatprep.subr.bf16.mxu1 %v4560_v26  ;;  %v4647_v25 = vld [vmem:[%s5163_s17 + $0x44] ss:$84 sps:$4 sm:$0xff]   ;;  %v4650_v26 = vld [vmem:[%s5163_s17 + $0x4c] ss:$84 sps:$4 sm:$0xff]  }
  0xf8   : > { %4130 = vmatprep.mubr.msk.bf16.mxu1 %vm1660_vm0, %v5210_v29  ;;  %4128 = vmatprep.mubr.msk.bf16.mxu0 %vm1660_vm0, %v5210_v29 }
  0xfa   : > { %1878 = vmatpush1.bf16.msra.mxu0 %v4555_v27  ;;  %1929 = vmatpush1.bf16.msra.mxu1 %v4558_v28  ;;  %v4645_v27 = vld [vmem:[%s5163_s17 + $0x40] ss:$84 sps:$4 sm:$0xff]   ;;  %v4648_v28 = vld [vmem:[%s5163_s17 + $0x48] ss:$84 sps:$4 sm:$0xff]  }
  0xfb   : > { %1879 = vmatprep.subr.bf16.mxu0 %v4563_v30  ;;  %1930 = vmatprep.subr.bf16.mxu1 %v4566_v31  ;;  %v4653_v30 = vld [vmem:[%s5163_s17 + $0xec] ss:$84 sps:$4 sm:$0xff]   ;;  %v4656_v31 = vld [vmem:[%s5163_s17 + $0xf4] ss:$84 sps:$4 sm:$0xff]  }
  0xfe   : > { %1880 = vmatpush1.bf16.msra.mxu0 %v4561_v32  ;;  %1931 = vmatpush1.bf16.msra.mxu1 %v4564_v33  ;;  %v4651_v32 = vld [vmem:[%s5163_s17 + $0xe8] ss:$84 sps:$4 sm:$0xff]   ;;  %v4654_v33 = vld [vmem:[%s5163_s17 + $0xf0] ss:$84 sps:$4 sm:$0xff]  }
  0xff   : > { %1881 = vmatprep.subr.bf16.mxu0 %v4569_v34  ;;  %1932 = vmatprep.subr.bf16.mxu1 %v4572_v35  ;;  %v4659_v34 = vld [vmem:[%s5163_s17 + $0x194] ss:$84 sps:$4 sm:$0xff]   ;;  %v4662_v35 = vld [vmem:[%s5163_s17 + $0x19c] ss:$84 sps:$4 sm:$0xff]  }
 0x102   : > { %1882 = vmatpush1.bf16.msra.mxu0 %v4567_v36  ;;  %1933 = vmatpush1.bf16.msra.mxu1 %v4570_v37  ;;  %v4657_v36 = vld [vmem:[%s5163_s17 + $0x190] ss:$84 sps:$4 sm:$0xff]   ;;  %v4660_v37 = vld [vmem:[%s5163_s17 + $0x198] ss:$84 sps:$4 sm:$0xff]  }
 0x103   : > { %1883 = vmatprep.subr.bf16.mxu0 %v4575_v38  ;;  %1934 = vmatprep.subr.bf16.mxu1 %v4578_v40  ;;  %v4665_v38 = vld [vmem:[%s5163_s17 + $0x23c] ss:$84 sps:$4 sm:$0xff]   ;;  %v4668_v40 = vld [vmem:[%s5163_s17 + $0x244] ss:$84 sps:$4 sm:$0xff]  }
 0x106   : > { %1884 = vmatpush1.bf16.msra.mxu0 %v4573_v41  ;;  %1935 = vmatpush1.bf16.msra.mxu1 %v4576_v42  ;;  %v4663_v41 = vld [vmem:[%s5163_s17 + $0x238] ss:$84 sps:$4 sm:$0xff]   ;;  %v4666_v42 = vld [vmem:[%s5163_s17 + $0x240] ss:$84 sps:$4 sm:$0xff]  }
 0x107   : > { %1885 = vmatprep.subr.bf16.mxu0 %v4581_v43  ;;  %1936 = vmatprep.subr.bf16.mxu1 %v4584_v44  ;;  %v4671_v43 = vld [vmem:[%s5163_s17 + $0x2e4] ss:$84 sps:$4 sm:$0xff]   ;;  %v4674_v44 = vld [vmem:[%s5163_s17 + $0x2ec] ss:$84 sps:$4 sm:$0xff]  }
 0x10a   : > { %1886 = vmatpush1.bf16.msra.mxu0 %v4579_v45  ;;  %1937 = vmatpush1.bf16.msra.mxu1 %v4582_v46  ;;  %v4669_v45 = vld [vmem:[%s5163_s17 + $0x2e0] ss:$84 sps:$4 sm:$0xff]   ;;  %v4672_v46 = vld [vmem:[%s5163_s17 + $0x2e8] ss:$84 sps:$4 sm:$0xff]  }
 0x10b   : > { %1887 = vmatprep.subr.bf16.mxu0 %v4587_v47  ;;  %1938 = vmatprep.subr.bf16.mxu1 %v4590_v48  ;;  %v4677_v47 = vld [vmem:[%s5163_s17 + $0x38c] ss:$84 sps:$4 sm:$0xff]   ;;  %v4680_v48 = vld [vmem:[%s5163_s17 + $0x394] ss:$84 sps:$4 sm:$0xff]  }
 0x10e   : > { %1888 = vmatpush1.bf16.msra.mxu0 %v4585_v49  ;;  %1939 = vmatpush1.bf16.msra.mxu1 %v4588_v50  ;;  %v4675_v49 = vld [vmem:[%s5163_s17 + $0x388] ss:$84 sps:$4 sm:$0xff]   ;;  %v4678_v50 = vld [vmem:[%s5163_s17 + $0x390] ss:$84 sps:$4 sm:$0xff]  }
 0x10f   : > { %1973 = vmatprep.subr.bf16.mxu0 %v4593_v51  ;;  %2024 = vmatprep.subr.bf16.mxu1 %v4596_v52  ;;  %v4686_v51 = vld [vmem:[%s5163_s17 + $0x43c] ss:$84 sps:$4 sm:$0xff]  }
 0x110   : > { %v4681_v52 = vld [vmem:[%s5163_s17 + $0x430] ss:$84 sps:$4 sm:$0xff]  }
 0x111   : > { %1955 = vmatmul.mubr.bf16.vlgmr.msra.gmra.mrb[16].mxu1 %v5226_v39  ;;  %1904 = vmatmul.mubr.bf16.vlgmr.msra.gmra.mrb[16].mxu0 %v5226_v39 }
 0x112   : > { %1974 = vmatpush1.bf16.msra.mxu0 %v4591_v55  ;;  %2025 = vmatpush1.bf16.msra.mxu1 %v4594_v56  ;;  %v4684_v55 = vld [vmem:[%s5163_s17 + $0x438] ss:$84 sps:$4 sm:$0xff]   ;;  %v4689_v56 = vld [vmem:[%s5163_s17 + $0x4dc] ss:$84 sps:$4 sm:$0xff]  }
 0x113   : > { %1975 = vmatprep.subr.bf16.mxu0 %v4599_v57  ;;  %2026 = vmatprep.subr.bf16.mxu1 %v4602_v58  ;;  %v4692_v57 = vld [vmem:[%s5163_s17 + $0x4e4] ss:$84 sps:$4 sm:$0xff]  }
 0x114   : > { %4131 = vmatprep.mubr.msk.bf16.mxu1 %vm1660_vm0, %v5243_v53  ;;  %4129 = vmatprep.mubr.msk.bf16.mxu0 %vm1660_vm0, %v5243_v53  ;;  %v4687_v58 = vld [vmem:[%s5163_s17 + $0x4d8] ss:$84 sps:$4 sm:$0xff]  }
 0x116   : > { %1976 = vmatpush1.bf16.msra.mxu0 %v4597_v59  ;;  %2027 = vmatpush1.bf16.msra.mxu1 %v4600_v60  ;;  %v4690_v59 = vld [vmem:[%s5163_s17 + $0x4e0] ss:$84 sps:$4 sm:$0xff]   ;;  %v4695_v60 = vld [vmem:[%s5163_s17 + $0x584] ss:$84 sps:$4 sm:$0xff]  }
 0x117   : > { %1977 = vmatprep.subr.bf16.mxu0 %v4605_v61  ;;  %2028 = vmatprep.subr.bf16.mxu1 %v4608_v62  ;;  %v4698_v61 = vld [vmem:[%s5163_s17 + $0x58c] ss:$84 sps:$4 sm:$0xff]  }
 0x118   : > { %v2226_v62 = vld [vmem:[%s5174_s27 + $0x8] sm:$0xff] }
 0x119   : > { %1965 = vmatmul.mubr.bf16.gmra.mrb[20].mxu1 %v5245_v54  ;;  %1914 = vmatmul.mubr.bf16.gmra.mrb[20].mxu0 %v5245_v54 }
 0x11a   : > { %1978 = vmatpush1.bf16.msra.mxu0 %v4603_v63  ;;  %2029 = vmatpush1.bf16.msra.mxu1 %v4606_v0  ;;  %v2233_v63 = vld [vmem:[%s5174_s27 + $0x40] sm:$0xff] }
 0x11b   : > { %1979 = vmatprep.subr.bf16.mxu0 %v4611_v1  ;;  %2030 = vmatprep.subr.bf16.mxu1 %v4614_v2  ;;  %v4693_v0 = vld [vmem:[%s5163_s17 + $0x580] ss:$84 sps:$4 sm:$0xff]   ;;  %v4696_v1 = vld [vmem:[%s5163_s17 + $0x588] ss:$84 sps:$4 sm:$0xff]   ;;  %v5425_v2 = vpack.c.bf16 %v2233_v63, %v2226_v62 }
 0x11c   : > { %4134 = vmatprep.mubr.msk.bf16.mxu1 %vm1660_vm0, %v5210_v29  ;;  %4132 = vmatprep.mubr.msk.bf16.mxu0 %vm1660_vm0, %v5210_v29 }
 0x11e   : > { %1980 = vmatpush1.bf16.msra.mxu0 %v4609_v3  ;;  %2031 = vmatpush1.bf16.msra.mxu1 %v4612_v4  ;;  %v2225_v3 = vld [vmem:[%s5174_s27] sm:$0xff]  ;;  %v2232_v4 = vld [vmem:[%s5174_s27 + $0x38] sm:$0xff] }
 0x11f   : > { %1981 = vmatprep.subr.bf16.mxu0 %v4617_v5  ;;  %2032 = vmatprep.subr.bf16.mxu1 %v4620_v6  ;;  %v2228_v5 = vld [vmem:[%s5174_s27 + $0x18] sm:$0xff]  ;;  %v2235_v6 = vld [vmem:[%s5174_s27 + $0x50] sm:$0xff] }
 0x122   : > { %1982 = vmatpush1.bf16.msra.mxu0 %v4615_v7  ;;  %2033 = vmatpush1.bf16.msra.mxu1 %v4618_v8  ;;  %v4699_v7 = vld [vmem:[%s5163_s17 + $0x50] ss:$84 sps:$4 sm:$0xff]   ;;  %v5432_v8 = vpack.c.bf16 %v2232_v4, %v2225_v3 }
 0x123   : > { %1983 = vmatprep.subr.bf16.mxu0 %v4623_v9  ;;  %2034 = vmatprep.subr.bf16.mxu1 %v4626_v10  ;;  %v4916_v9 = vmov 0   ;;  %v5437_v10 = vpack.c.bf16 %v2235_v6, %v2228_v5  ;;  %v4185_v3 = vld [vmem:[%s5460_s14 + $0x50] sm:$0xff]  ;;  %v4186_v6 = vld [vmem:[%s5460_s14 + $0x58] sm:$0xff] }
 0x126   : > { %1984 = vmatpush1.bf16.msra.mxu0 %v4621_v11  ;;  %2035 = vmatpush1.bf16.msra.mxu1 %v4624_v12  ;;  %v4700_v11 = vld [vmem:[%s5163_s17 + $0xf8] ss:$84 sps:$4 sm:$0xff]   ;;  %v4702_v12 = vld [vmem:[%s5163_s17 + $0x248] ss:$84 sps:$4 sm:$0xff]  }
 0x127   : > { %1985 = vmatprep.subr.bf16.mxu0 %v4629_v13  ;;  %2036 = vmatprep.subr.bf16.mxu1 %v4632_v14  ;;  %v4917_v13 = vmov 0.0   ;;  %v2227_v14 = vld [vmem:[%s5174_s27 + $0x10] sm:$0xff] }
 0x12a   : > { %1986 = vmatpush1.bf16.msra.mxu0 %v4627_v15  ;;  %2037 = vmatpush1.bf16.msra.mxu1 %v4630_v16  ;;  %v2234_v15 = vld [vmem:[%s5174_s27 + $0x48] sm:$0xff] }
 0x12b   : > { %1987 = vmatprep.subr.bf16.mxu0 %v4635_v17  ;;  %2038 = vmatprep.subr.bf16.mxu1 %v4638_v18  ;;  %v4708_v16 = vld [vmem:[%s5155_s11 + $0x4] ss:$8 sps:$4 sm:$0xff]  }
 0x12c   : > { %v2230_v17 = vld [vmem:[%s5174_s27 + $0x28] sm:$0xff]  ;;  %v2237_v18 = vld [vmem:[%s5174_s27 + $0x60] sm:$0xff] }
 0x12e   : > { %1988 = vmatpush1.bf16.msra.mxu0 %v4633_v19  ;;  %2039 = vmatpush1.bf16.msra.mxu1 %v4636_v20  ;;  %v2239_v19 = vld [vmem:[%s5460_s14] sm:$0xff] }
 0x12f   : > { %1989 = vmatprep.subr.bf16.mxu0 %v4641_v21  ;;  %2040 = vmatprep.subr.bf16.mxu1 %v4644_v22  ;;  %v4703_v20 = vld [vmem:[%s5163_s17 + $0x2f0] ss:$84 sps:$4 sm:$0xff]   ;;  %v5470_v21 = vpack.c.bf16 %v2234_v15, %v2227_v14  ;;  %v5473_v22 = vpack.c.bf16 %v2237_v18, %v2230_v17 }
 0x132   : > { %1990 = vmatpush1.bf16.msra.mxu0 %v4639_v23  ;;  %2041 = vmatpush1.bf16.msra.mxu1 %v4642_v24  ;;  %v2240_v23 = vld [vmem:[%s5460_s14 + $0x8] sm:$0xff] }
 0x133   : > { %2075 = vmatprep.subr.bf16.mxu0 %v4647_v25  ;;  %2126 = vmatprep.subr.bf16.mxu1 %v4650_v26  ;;  %v4704_v24 = vld [vmem:[%s5163_s17 + $0x398] ss:$84 sps:$4 sm:$0xff]   ;;  %v4705_v26 = vld [vmem:[%s5163_s17 + $0x440] ss:$84 sps:$4 sm:$0xff]  }
 0x134   : > { %v2241_v25 = vld [vmem:[%s5460_s14 + $0x10] sm:$0xff] }
 0x135   : > { %2057 = vmatmul.mubr.bf16.vlgmr.msra.gmra.mrb[24].mxu1 %v5226_v39  ;;  %2006 = vmatmul.mubr.bf16.vlgmr.msra.gmra.mrb[24].mxu0 %v5226_v39 }
 0x136   : > { %2076 = vmatpush1.bf16.msra.mxu0 %v4645_v27  ;;  %2127 = vmatpush1.bf16.msra.mxu1 %v4648_v28  ;;  %v2229_v27 = vld [vmem:[%s5174_s27 + $0x20] sm:$0xff]  ;;  %v2236_v28 = vld [vmem:[%s5174_s27 + $0x58] sm:$0xff] }
 0x137   : > { %2077 = vmatprep.subr.bf16.mxu0 %v4653_v30  ;;  %2128 = vmatprep.subr.bf16.mxu1 %v4656_v31  ;;  %v4706_v30 = vld [vmem:[%s5163_s17 + $0x4e8] ss:$84 sps:$4 sm:$0xff]   ;;  %v5492_v31 = vpack.c.bf16 %v2236_v28, %v2229_v27 }
 0x138   : > { %4135 = vmatprep.mubr.msk.bf16.mxu1 %vm1660_vm0, %v5243_v53  ;;  %4133 = vmatprep.mubr.msk.bf16.mxu0 %vm1660_vm0, %v5243_v53 }
 0x13a   : > { %2078 = vmatpush1.bf16.msra.mxu0 %v4651_v32  ;;  %2129 = vmatpush1.bf16.msra.mxu1 %v4654_v33  ;;  %v4707_v32 = vld [vmem:[%s5163_s17 + $0x590] ss:$84 sps:$4 sm:$0xff]  }
 0x13b   : > { %2079 = vmatprep.subr.bf16.mxu0 %v4659_v34  ;;  %2130 = vmatprep.subr.bf16.mxu1 %v4662_v35  ;;  %v2231_v33 = vld [vmem:[%s5174_s27 + $0x30] sm:$0xff]  ;;  %v2238_v34 = vld [vmem:[%s5174_s27 + $0x68] sm:$0xff]  ;;  %v4918_v35 = vmov 0.0|0.0  }
 0x13d   : > { %2067 = vmatmul.mubr.bf16.gmra.mrb[28].mxu1 %v5245_v54  ;;  %2016 = vmatmul.mubr.bf16.gmra.mrb[28].mxu0 %v5245_v54 }
 0x13e   : > { %2080 = vmatpush1.bf16.msra.mxu0 %v4657_v36  ;;  %2131 = vmatpush1.bf16.msra.mxu1 %v4660_v37  ;;  %v5505_v36 = vpack.c.bf16 %v2238_v34, %v2231_v33  ;;  %v4709_v37 = vld [vmem:[%s5155_s11] ss:$8 sps:$4 sm:$0xff]   ;;  %s4830_s11 = scalar_lea.vmem %s6122_s0, 2688 }
 0x13f   : > { %2081 = vmatprep.subr.bf16.mxu0 %v4665_v38  ;;  %2132 = vmatprep.subr.bf16.mxu1 %v4668_v40  ;;  %v4156_v38 = vld [vmem:[%s5460_s14 + $0x28] sm:$0xff]  ;;  %p4831_p12 = scmp.ne.s32.totalorder %s6122_s0, %s4830_s11  ;;  %p4838_p4 = scmp.lt.s32.totalorder %s4836_s10, %s4830_s11 }
 0x140   : > { %4138 = vmatprep.mubr.msk.bf16.mxu1 %vm1660_vm0, %v5210_v29  ;;  %4136 = vmatprep.mubr.msk.bf16.mxu0 %vm1660_vm0, %v5210_v29  ;;  %v4683_v29 = vld [vmem:[%s5163_s17 + $0x434] ss:$84 sps:$4 sm:$0xff]  }
 0x141   : > { %p4832_p8 = pnand %p4831_p12, %p6255_p0  ;;  %p4839_p3 = por %p4838_p4, %p4837_p11 }
 0x142   : > { %2082 = vmatpush1.bf16.msra.mxu0 %v4663_v41  ;;  %2133 = vmatpush1.bf16.msra.mxu1 %v4666_v42 }
 0x143   : > { %2083 = vmatprep.subr.bf16.mxu0 %v4671_v43  ;;  %2134 = vmatprep.subr.bf16.mxu1 %v4674_v44  ;;  %p4833_p10 = pneg %p4832_p8 }
 0x145   : > { %p4840_p13 = pnand %p4839_p3, %p4833_p10 }
 0x146   : > { %2084 = vmatpush1.bf16.msra.mxu0 %v4669_v45  ;;  %2135 = vmatpush1.bf16.msra.mxu1 %v4672_v46 }
 0x147   : > { %2085 = vmatprep.subr.bf16.mxu0 %v4677_v47  ;;  %2136 = vmatprep.subr.bf16.mxu1 %v4680_v48  ;;  %v4169_v48 = vld [vmem:[%s5460_s14 + $0x30] sm:$0xff] }
 0x14a   : > { %2086 = vmatpush1.bf16.msra.mxu0 %v4675_v49  ;;  %2137 = vmatpush1.bf16.msra.mxu1 %v4678_v50 }
 0x14b   : > { %2087 = vmatprep.subr.bf16.mxu0 %v4683_v29  ;;  %2138 = vmatprep.subr.bf16.mxu1 %v4686_v51 }
 0x14e   : > { %2088 = vmatpush1.bf16.msra.mxu0 %v4681_v52  ;;  %2139 = vmatpush1.bf16.msra.mxu1 %v4684_v55 }
 0x14f   : > { %2089 = vmatprep.subr.bf16.mxu0 %v4689_v56  ;;  %2140 = vmatprep.subr.bf16.mxu1 %v4692_v57  ;;  %v4170_v56 = vld [vmem:[%s5460_s14 + $0x38] sm:$0xff] }
 0x152   : > { %2090 = vmatpush1.bf16.msra.mxu0 %v4687_v58  ;;  %2141 = vmatpush1.bf16.msra.mxu1 %v4690_v59  ;;  %v4171_v59 = vld [vmem:[%s5460_s14 + $0x40] sm:$0xff] }
 0x153   : > { %2091 = vmatprep.subr.bf16.mxu0 %v4695_v60  ;;  %2142 = vmatprep.subr.bf16.mxu1 %v4698_v61  ;;  %v4184_v60 = vld [vmem:[%s5460_s14 + $0x48] sm:$0xff] }
 0x156   : > { %2092 = vmatpush1.bf16.msra.mxu0 %v4693_v0  ;;  %2143 = vmatpush1.bf16.msra.mxu1 %v4696_v1 }
 0x157   : > { %2177 = vmatprep.subr.bf16.mxu0 %v4916_v9  ;;  %4275 = vmatprep.subr.bf16.mxu1 %v5425_v2 }
 0x159   : > { %2159 = vmatmul.mubr.bf16.vlgmr.msra.gmra.mrb[32].mxu1 %v5226_v39  ;;  %2108 = vmatmul.mubr.bf16.vlgmr.msra.gmra.mrb[32].mxu0 %v5226_v39  ;;  %v4701_v39 = vld [vmem:[%s5163_s17 + $0x1a0] ss:$84 sps:$4 sm:$0xff]  }
 0x15a   : > { %2178 = vmatpush1.bf16.msra.mxu0 %v4699_v7  ;;  %4277 = vmatpush1.bf16.msra.mxu1 %v5432_v8 }
 0x15b   : > { %2179 = vmatprep.subr.bf16.mxu0 %v4916_v9  ;;  %4139 = vmatprep.mubr.msk.bf16.mxu1 %vm1660_vm0, %v5243_v53 }
 0x15c   : > { %4279 = vmatprep.subr.bf16.mxu1 %v5437_v10  ;;  %4137 = vmatprep.mubr.msk.bf16.mxu0 %vm1660_vm0, %v5243_v53 }
 0x15e   : > { %2180 = vmatpush1.bf16.msra.mxu0 %v4700_v11 }
 0x15f   : > { %2181 = vmatprep.subr.bf16.mxu0 %v4916_v9 }
 0x161   : > { %2169 = vmatmul.mubr.bf16.gmra.mrb[36].mxu1 %v5245_v54  ;;  %2118 = vmatmul.mubr.bf16.gmra.mrb[36].mxu0 %v5245_v54 }
 0x162   : > { %2182 = vmatpush1.bf16.msra.mxu0 %v4701_v39  ;;  %2315 = vmatprep.mubr.f32.mxu1 %v4917_v13 }
 0x163   : > { %2183 = vmatprep.subr.bf16.mxu0 %v4916_v9  ;;  %4140 = vmatprep.mubr.msk.bf16.mxu0 %vm1660_vm0, %v4708_v16 }
 0x166   : > { %2184 = vmatpush1.bf16.msra.mxu0 %v4702_v12 }
 0x167   : > { %2185 = vmatprep.subr.bf16.mxu0 %v4916_v9 }
 0x169   : > { %4142 = vmatmul.mubr.msk.f32.vlgmr.msra.gmra.mrb[40].mxu1 %vm1660_vm0, %v2239_v19 }
 0x16a   : > { %2186 = vmatpush1.bf16.msra.mxu0 %v4703_v20  ;;  %4281 = vmatpush1.bf16.msra.mxu1 %v5470_v21 }
 0x16b   : > { %2321 = vmatprep.mubr.f32.mxu1 %v4917_v13  ;;  %2187 = vmatprep.subr.bf16.mxu0 %v4916_v9 }
 0x16c   : > { %4283 = vmatprep.subr.bf16.mxu1 %v5473_v22 }
 0x16d   : > { %4143 = vmatmul.mubr.msk.f32.gmra.mrb[42].mxu1 %vm1660_vm0, %v2240_v23 }
 0x16e   : > { %2188 = vmatpush1.bf16.msra.mxu0 %v4704_v24  ;;  %2327 = vmatprep.mubr.f32.mxu1 %v4917_v13 }
 0x16f   : > { %2189 = vmatprep.subr.bf16.mxu0 %v4916_v9 }
 0x171   : > { %4144 = vmatmul.mubr.msk.f32.gmra.mrb[44].mxu1 %vm1660_vm0, %v2241_v25 }
 0x172   : > { %2190 = vmatpush1.bf16.msra.mxu0 %v4705_v26  ;;  %2398 = vmatprep.mubr.f32.mxu1 %v4917_v13 }
 0x173   : > { %2191 = vmatprep.subr.bf16.mxu0 %v4916_v9 }
 0x175   : > { %4145 = vmatmul.mubr.msk.f32.vlgmr.msra.gmra.mrb[46].mxu1 %vm1660_vm0, %v2239_v19 }
 0x176   : > { %2192 = vmatpush1.bf16.msra.mxu0 %v4706_v30  ;;  %4285 = vmatpush1.bf16.msra.mxu1 %v5492_v31 }
 0x177   : > { %2404 = vmatprep.mubr.f32.mxu1 %v4917_v13  ;;  %2193 = vmatprep.subr.bf16.mxu0 %v4916_v9 }
 0x178   : > { %4334 = vmatprep.subr.bf16.mxu1 %v4918_v35 }
 0x179   : > { %4146 = vmatmul.mubr.msk.f32.gmra.mrb[48].mxu1 %vm1660_vm0, %v2240_v23 }
 0x17a   : > { %2194 = vmatpush1.bf16.msra.mxu0 %v4707_v32  ;;  %2410 = vmatprep.mubr.f32.mxu1 %v4917_v13 }
 0x17b   : > { %4286 = vmatprep.subr.bf16.mxu0 %v4918_v35 }
 0x17d   : > { %2210 = vmatmul.mubr.bf16.vlgmr.msra.gmra.mrb[40].mxu0 %v4709_v37  ;;  %4147 = vmatmul.mubr.msk.f32.gmra.mrb[50].mxu1 %vm1660_vm0, %v2241_v25 }
 0x17e   : > { %2481 = vmatprep.mubr.f32.mxu1 %v4917_v13  ;;  %4288 = vmatpush3.bf16.msra.mxu0 %v5505_v36 }
 0x17f   : > { %4141 = vmatprep.mubr.msk.bf16.mxu0 %vm1660_vm0, %v5243_v53  ;;  %4294 = vmatprep.subr.bf16.mxu0 %v5437_v10  ;;  %v4154_v53 = vld [vmem:[%s5460_s14 + $0x18] sm:$0xff] }
 0x181   : > { %4148 = vmatmul.mubr.msk.f32.vlgmr.msra.gmra.mrb[52].mxu1 %vm1660_vm0, %v2239_v19 }
 0x182   : > { %4335 = vmatpush3.bf16.msra.mxu1 %v5505_v36  ;;  %2487 = vmatprep.mubr.f32.mxu1 %v4917_v13 }
 0x183   : > { %4290 = vmatprep.subr.bf16.mxu1 %v5425_v2 }
 0x185   : > { %2218 = vmatmul.mubr.bf16.gmra.mrb[44].mxu0 %v5245_v54  ;;  %4149 = vmatmul.mubr.msk.f32.gmra.mrb[54].mxu1 %vm1660_vm0, %v2240_v23  ;;  %v4155_v54 = vld [vmem:[%s5460_s14 + $0x20] sm:$0xff] }
 0x186   : > { %2493 = vmatprep.mubr.f32.mxu1 %v4917_v13  ;;  %4226 = vmatprep.mubr.msk.f32.mxu0 %vm4919_vm1, %v4917_v13 }
 0x189   : > { %4150 = vmatmul.mubr.msk.f32.gmra.mrb[56].mxu1 %vm1660_vm0, %v2241_v25 }
 0x18a   : > { %4229 = vmatprep.mubr.msk.f32.mxu1 %vm4919_vm1, %v4917_v13 }
 0x18d   : > { %4227 = vmatmul.mubr.msk.f32.vlgmr.msra.gmra.mrb[48].mxu0 %vm1660_vm0, %v2239_v19  ;;  %4230 = vmatmul.mubr.msk.f32.vlgmr.msra.gmra.mrb[58].mxu1 %vm1660_vm0, %v2240_v23 }
 0x18e   : > { %4292 = vmatpush1.bf16.msra.mxu1 %v5432_v8  ;;  %4296 = vmatpush1.bf16.msra.mxu0 %v5470_v21 }
 0x18f   : > { %4232 = vmatprep.mubr.msk.f32.mxu1 %vm4919_vm1, %v4917_v13  ;;  %2740 = vmatprep.mubr.f32.mxu0 %v4917_v13 }
 0x190   : > { %4298 = vmatprep.subr.bf16.mxu1 %v5473_v22  ;;  %4301 = vmatprep.subr.bf16.mxu0 %v4918_v35 }
 0x191   : > { %4233 = vmatmul.mubr.msk.f32.gmra.mrb[60].mxu1 %vm1660_vm0, %v2241_v25  ;;  %4160 = vmatmul.mubr.msk.f32.vlgmr.msra.gmra.mrb[50].mxu0 %vm1660_vm0, %v4154_v53 }
 0x192   : > { %2657 = vmatprep.mubr.f32.mxu1 %v4917_v13  ;;  %2746 = vmatprep.mubr.f32.mxu0 %v4917_v13 }
 0x193   : > { %4303 = vmatpush3.bf16.msra.mxu0 %v5505_v36 }
 0x194   : > { %4309 = vmatprep.subr.bf16.mxu0 %v5437_v10 }
 0x195   : > { %4157 = vmatmul.mubr.msk.f32.vlgmr.msra.gmra.mrb[62].mxu1 %vm1660_vm0, %v4154_v53  ;;  %4161 = vmatmul.mubr.msk.f32.gmra.mrb[52].mxu0 %vm1660_vm0, %v4155_v54 }
 0x196   : > { %4300 = vmatpush1.bf16.msra.mxu1 %v5492_v31  ;;  %2663 = vmatprep.mubr.f32.mxu1 %v4917_v13 }
 0x197   : > { %2752 = vmatprep.mubr.f32.mxu0 %v4917_v13  ;;  %4305 = vmatprep.subr.bf16.mxu1 %v5425_v2 }
 0x199   : > { %4158 = vmatmul.mubr.msk.f32.gmra.mrb[64].mxu1 %vm1660_vm0, %v4155_v54  ;;  %4162 = vmatmul.mubr.msk.f32.gmra.mrb[54].mxu0 %vm1660_vm0, %v4156_v38 }
 0x19a   : > { %2669 = vmatprep.mubr.f32.mxu1 %v4917_v13  ;;  %4239 = vmatprep.mubr.msk.f32.mxu0 %vm4919_vm1, %v4917_v13 }
 0x19c   : > { %v5556_v40 = vpop.f32.mrb[0].mxu1  ;;  %v5558_v41 = vpop.f32.mrb[0].mxu0 }
 0x19d   : > { %v5560_v42 = vpop.f32.mrb[1].mxu1  ;;  %4159 = vmatmul.mubr.msk.f32.gmra.mrb[66].mxu1 %vm1660_vm0, %v4156_v38  ;;  %4240 = vmatmul.mubr.msk.f32.vlgmr.msra.gmra.mrb[56].mxu0 %vm1660_vm0, %v4154_v53  ;;  %v5564_v43 = vpop.f32.mrb[1].mxu0 }
 0x19e   : > { %v5566_v44 = vpop.f32.mrb[2].mxu1  ;;  %2823 = vmatprep.mubr.f32.mxu1 %v4917_v13  ;;  %4242 = vmatprep.mubr.msk.f32.mxu0 %vm4919_vm1, %v4917_v13  ;;  %v5571_v45 = vpop.f32.mrb[2].mxu0 }
 0x19f   : > { %v5573_v46 = vpop.f32.mrb[3].mxu1  ;;  %v5575_v47 = vpop.f32.mrb[3].mxu0  ;;  %4311 = vmatpush1.bf16.msra.mxu0 %v5470_v21 }
 0x1a0   : > { %4316 = vmatprep.subr.bf16.mxu0 %v4918_v35 }
 0x1a1   : > { %4163 = vmatmul.mubr.msk.f32.vlgmr.msra.gmra.mrb[68].mxu1 %vm1660_vm0, %v4154_v53  ;;  %4243 = vmatmul.mubr.msk.f32.gmra.mrb[58].mxu0 %vm1660_vm0, %v4155_v54 }
 0x1a2   : > { %4307 = vmatpush1.bf16.msra.mxu1 %v5432_v8  ;;  %2829 = vmatprep.mubr.f32.mxu1 %v4917_v13 }
 0x1a3   : > { %4245 = vmatprep.mubr.msk.f32.mxu0 %vm4919_vm1, %v4917_v13  ;;  %4313 = vmatprep.subr.bf16.mxu1 %v5473_v22 }
 0x1a4   : > { %v5591_v49 = vpop.f32.mrb[4].mxu1  ;;  %v5593_v50 = vpop.f32.mrb[4].mxu0 }
 0x1a5   : > { %4164 = vmatmul.mubr.msk.f32.gmra.mrb[70].mxu1 %vm1660_vm0, %v4155_v54  ;;  %4246 = vmatmul.mubr.msk.f32.gmra.mrb[60].mxu0 %vm1660_vm0, %v4156_v38  ;;  %v5595_v29 = vpop.f32.mrb[5].mxu1  ;;  %v5597_v51 = vpop.f32.mrb[5].mxu0 }
 0x1a6   : > { %2835 = vmatprep.mubr.f32.mxu1 %v4917_v13  ;;  %3082 = vmatprep.mubr.f32.mxu0 %v4917_v13  ;;  %v1766_v52 = vpop.f32.mrb[6].mxu1  ;;  %v1715_v55 = vpop.f32.mrb[6].mxu0 }
 0x1a7   : > { %v1767_v57 = vpop.f32.mrb[7].mxu1  ;;  %v1716_v58 = vpop.f32.mrb[7].mxu0 }
 0x1a9   : > { %4165 = vmatmul.mubr.msk.f32.gmra.mrb[72].mxu1 %vm1660_vm0, %v4156_v38  ;;  %4175 = vmatmul.mubr.msk.f32.vlgmr.msra.gmra.mrb[62].mxu0 %vm1660_vm0, %v4169_v48 }
 0x1aa   : > { %2999 = vmatprep.mubr.f32.mxu1 %v4917_v13  ;;  %3088 = vmatprep.mubr.f32.mxu0 %v4917_v13 }
 0x1ab   : > { %4318 = vmatpush3.bf16.msra.mxu0 %v5505_v36 }
 0x1ac   : > { %4324 = vmatprep.subr.bf16.mxu0 %v5437_v10 }
 0x1ad   : > { %4172 = vmatmul.mubr.msk.f32.vlgmr.msra.gmra.mrb[74].mxu1 %vm1660_vm0, %v4169_v48  ;;  %4176 = vmatmul.mubr.msk.f32.gmra.mrb[64].mxu0 %vm1660_vm0, %v4170_v56 }
 0x1ae   : > { %4315 = vmatpush1.bf16.msra.mxu1 %v5492_v31  ;;  %3005 = vmatprep.mubr.f32.mxu1 %v4917_v13 }
 0x1af   : > { %3094 = vmatprep.mubr.f32.mxu0 %v4917_v13  ;;  %4320 = vmatprep.subr.bf16.mxu1 %v5425_v2 }
 0x1b1   : > { %4173 = vmatmul.mubr.msk.f32.gmra.mrb[76].mxu1 %vm1660_vm0, %v4170_v56  ;;  %4177 = vmatmul.mubr.msk.f32.gmra.mrb[66].mxu0 %vm1660_vm0, %v4171_v59 }
 0x1b2   : > { %3011 = vmatprep.mubr.f32.mxu1 %v4917_v13  ;;  %4252 = vmatprep.mubr.msk.f32.mxu0 %vm4919_vm1, %v4917_v13 }
 0x1b5   : > { %4174 = vmatmul.mubr.msk.f32.gmra.mrb[78].mxu1 %vm1660_vm0, %v4171_v59  ;;  %4253 = vmatmul.mubr.msk.f32.vlgmr.msra.gmra.mrb[68].mxu0 %vm1660_vm0, %v4169_v48 }
 0x1b6   : > { %3165 = vmatprep.mubr.f32.mxu1 %v4917_v13  ;;  %4255 = vmatprep.mubr.msk.f32.mxu0 %vm4919_vm1, %v4917_v13 }
 0x1b7   : > { %4326 = vmatpush1.bf16.msra.mxu0 %v5470_v21 }
 0x1b8   : > { %4331 = vmatprep.subr.bf16.mxu0 %v4918_v35 }
 0x1b9   : > { %4178 = vmatmul.mubr.msk.f32.vlgmr.msra.gmra.mrb[80].mxu1 %vm1660_vm0, %v4169_v48  ;;  %4256 = vmatmul.mubr.msk.f32.gmra.mrb[70].mxu0 %vm1660_vm0, %v4170_v56 }
 0x1ba   : > { %4322 = vmatpush1.bf16.msra.mxu1 %v5432_v8  ;;  %3171 = vmatprep.mubr.f32.mxu1 %v4917_v13 }
 0x1bb   : > { %4258 = vmatprep.mubr.msk.f32.mxu0 %vm4919_vm1, %v4917_v13  ;;  %4328 = vmatprep.subr.bf16.mxu1 %v5473_v22 }
 0x1bd   : > { %4179 = vmatmul.mubr.msk.f32.gmra.mrb[82].mxu1 %vm1660_vm0, %v4170_v56  ;;  %4259 = vmatmul.mubr.msk.f32.gmra.mrb[72].mxu0 %vm1660_vm0, %v4171_v59 }
 0x1be   : > { %3177 = vmatprep.mubr.f32.mxu1 %v4917_v13  ;;  %3424 = vmatprep.mubr.f32.mxu0 %v4917_v13 }
 0x1c0   : > { %v5637_v61 = vpop.f32.mrb[8].mxu1  ;;  %v5639_v62 = vpop.f32.mrb[8].mxu0 }
 0x1c1   : > { %v5641_v63 = vpop.f32.mrb[9].mxu1  ;;  %4180 = vmatmul.mubr.msk.f32.gmra.mrb[84].mxu1 %vm1660_vm0, %v4171_v59  ;;  %4190 = vmatmul.mubr.msk.f32.vlgmr.msra.gmra.mrb[74].mxu0 %vm1660_vm0, %v4184_v60  ;;  %v5645_v0 = vpop.f32.mrb[9].mxu0 }
 0x1c2   : > { %v5647_v1 = vpop.f32.mrb[10].mxu1  ;;  %3341 = vmatprep.mubr.f32.mxu1 %v4917_v13  ;;  %3430 = vmatprep.mubr.f32.mxu0 %v4917_v13  ;;  %v5651_v2 = vpop.f32.mrb[10].mxu0 }
 0x1c3   : > { %v5654_v4 = vpop.f32.mrb[11].mxu1  ;;  %v5656_v5 = vpop.f32.mrb[11].mxu0  ;;  %4333 = vmatpush3.bf16.msra.mxu0 %v5505_v36 }
 0x1c5   : > { %4187 = vmatmul.mubr.msk.f32.vlgmr.msra.gmra.mrb[86].mxu1 %vm1660_vm0, %v4184_v60  ;;  %4191 = vmatmul.mubr.msk.f32.gmra.mrb[76].mxu0 %vm1660_vm0, %v4185_v3 }
 0x1c6   : > { %4330 = vmatpush1.bf16.msra.mxu1 %v5492_v31  ;;  %3347 = vmatprep.mubr.f32.mxu1 %v4917_v13 }
 0x1c7   : > { %3436 = vmatprep.mubr.f32.mxu0 %v4917_v13 }
 0x1c8   : > { %v5665_v7 = vpop.f32.mrb[12].mxu1  ;;  %v5667_v8 = vpop.f32.mrb[12].mxu0 }
 0x1c9   : > { %4188 = vmatmul.mubr.msk.f32.gmra.mrb[88].mxu1 %vm1660_vm0, %v4185_v3  ;;  %4192 = vmatmul.mubr.msk.f32.gmra.mrb[78].mxu0 %vm1660_vm0, %v4186_v6  ;;  %v5671_v9 = vpop.f32.mrb[13].mxu1  ;;  %v5673_v10 = vpop.f32.mrb[13].mxu0 }
 0x1ca   : > { %3353 = vmatprep.mubr.f32.mxu1 %v4917_v13  ;;  %4265 = vmatprep.mubr.msk.f32.mxu0 %vm4919_vm1, %v4917_v13  ;;  %v1868_v11 = vpop.f32.mrb[14].mxu1  ;;  %v1817_v39 = vpop.f32.mrb[14].mxu0 }
 0x1cb   : > { %v1869_v12 = vpop.f32.mrb[15].mxu1  ;;  %v1818_v14 = vpop.f32.mrb[15].mxu0 }
 0x1cd   : > { %4189 = vmatmul.mubr.msk.f32.gmra.mrb[90].mxu1 %vm1660_vm0, %v4186_v6  ;;  %4266 = vmatmul.mubr.msk.f32.vlgmr.msra.gmra.mrb[80].mxu0 %vm1660_vm0, %v4184_v60 }
 0x1ce   : > { %3507 = vmatprep.mubr.f32.mxu1 %v4917_v13  ;;  %4268 = vmatprep.mubr.msk.f32.mxu0 %vm4919_vm1, %v4917_v13 }
 0x1d1   : > { %4193 = vmatmul.mubr.msk.f32.vlgmr.msra.gmra.mrb[92].mxu1 %vm1660_vm0, %v4184_v60  ;;  %4269 = vmatmul.mubr.msk.f32.gmra.mrb[82].mxu0 %vm1660_vm0, %v4185_v3 }
 0x1d2   : > { %3513 = vmatprep.mubr.f32.mxu1 %v4917_v13  ;;  %4271 = vmatprep.mubr.msk.f32.mxu0 %vm4919_vm1, %v4917_v13 }
 0x1d5   : > { %4194 = vmatmul.mubr.msk.f32.gmra.mrb[94].mxu1 %vm1660_vm0, %v4185_v3  ;;  %4272 = vmatmul.mubr.msk.f32.gmra.mrb[84].mxu0 %vm1660_vm0, %v4186_v6  ;;  %v586_v3 = vlaneseq }
 0x1d6   : > { %3519 = vmatprep.mubr.f32.mxu1 %v4917_v13 }
 0x1d9   : > { %4195 = vmatmul.mubr.msk.f32.gmra.mrb[96].mxu1 %vm1660_vm0, %v4186_v6 }
 0x1e4   : > { %v5692_v15 = vpop.f32.mrb[16].mxu1  ;;  %v5694_v16 = vpop.f32.mrb[16].mxu0 }
 0x1e5   : > { %v5696_v17 = vpop.f32.mrb[17].mxu1  ;;  %v5698_v18 = vpop.f32.mrb[17].mxu0 }
 0x1e6   : > { %v5700_v19 = vpop.f32.mrb[18].mxu1  ;;  %v5702_v20 = vpop.f32.mrb[18].mxu0 }
 0x1e7   : > { %v5704_v21 = vpop.f32.mrb[19].mxu1  ;;  %v5706_v22 = vpop.f32.mrb[19].mxu0 }
 0x1ec   : > { %v5708_v23 = vpop.f32.mrb[20].mxu1  ;;  %v5710_v13 = vpop.f32.mrb[20].mxu0 }
 0x1ed   : > { %v5712_v24 = vpop.f32.mrb[21].mxu1  ;;  %v5714_v25 = vpop.f32.mrb[21].mxu0 }
 0x1ee   : > { %v1970_v26 = vpop.f32.mrb[22].mxu1  ;;  %v1919_v27 = vpop.f32.mrb[22].mxu0 }
 0x1ef   : > { %v1971_v28 = vpop.f32.mrb[23].mxu1  ;;  %v1920_v30 = vpop.f32.mrb[23].mxu0  ;;  %v5756_v27 = vshrl.u32 %v586_v3, 7 }
 0x1f1   : > { %v5759_v28 = vsub.s32 0, %v5756_v27  ;;  %v5762_v30 = vsub.s32 1, %v5756_v27 }
 0x208   : > { %v5716_v31 = vpop.f32.mrb[24].mxu1  ;;  %v5718_v32 = vpop.f32.mrb[24].mxu0 }
 0x209   : > { %6205 = vst [vmem:[#allocation20_spill] sm:$0xff] %v5716_v31  ;;  %v5720_v33 = vpop.f32.mrb[25].mxu1  ;;  %v5722_v34 = vpop.f32.mrb[25].mxu0 }
 0x20a   : > { %6206 = vst [vmem:[#allocation21_spill] sm:$0xff] %v5720_v33  ;;  %v5724_v35 = vpop.f32.mrb[26].mxu1  ;;  %v5726_v36 = vpop.f32.mrb[26].mxu0 }
 0x20b   : > { %6207 = vst [vmem:[#allocation22_spill] sm:$0xff] %v5724_v35  ;;  %v5728_v37 = vpop.f32.mrb[27].mxu1  ;;  %v5730_v53 = vpop.f32.mrb[27].mxu0 }
 0x20c   : > { %6208 = vst [vmem:[#allocation23_spill] sm:$0xff] %v5728_v37 }
 0x210   : > { %v5732_v54 = vpop.f32.mrb[28].mxu1  ;;  %v5734_v38 = vpop.f32.mrb[28].mxu0 }
 0x211   : > { %6209 = vst [vmem:[#allocation24_spill] sm:$0xff] %v5732_v54  ;;  %6210 = vst [vmem:[#allocation25_spill] sm:$0xff] %v5734_v38  ;;  %v5736_v48 = vpop.f32.mrb[29].mxu1  ;;  %v5738_v52 = vpop.f32.mrb[29].mxu0 }
 0x212   : > { %6211 = vst [vmem:[#allocation26_spill] sm:$0xff] %v5736_v48  ;;  %v2072_v55 = vpop.f32.mrb[30].mxu1  ;;  %v2021_v56 = vpop.f32.mrb[30].mxu0 }
 0x213   : > { %v2073_v57 = vpop.f32.mrb[31].mxu1  ;;  %v2022_v58 = vpop.f32.mrb[31].mxu0 }
 0x22c   : > { %v5740_v59 = vpop.f32.mrb[32].mxu1  ;;  %v5742_v60 = vpop.f32.mrb[32].mxu0 }
 0x22d   : > { %6212 = vst [vmem:[#allocation27_spill] sm:$0xff] %v5740_v59  ;;  %6213 = vst [vmem:[#allocation28_spill] sm:$0xff] %v5742_v60  ;;  %v5744_v6 = vpop.f32.mrb[33].mxu1  ;;  %v5746_v11 = vpop.f32.mrb[33].mxu0 }
 0x22e   : > { %6214 = vst [vmem:[#allocation29_spill] sm:$0xff] %v5744_v6  ;;  %6215 = vst [vmem:[#allocation30_spill] sm:$0xff] %v5746_v11  ;;  %v5748_v39 = vpop.f32.mrb[34].mxu1  ;;  %v5750_v12 = vpop.f32.mrb[34].mxu0 }
 0x22f   : > { %6216 = vst [vmem:[#allocation31_spill] sm:$0xff] %v5748_v39  ;;  %6217 = vst [vmem:[#allocation32_spill] sm:$0xff] %v5750_v12  ;;  %v5752_v14 = vpop.f32.mrb[35].mxu1  ;;  %v5754_v26 = vpop.f32.mrb[35].mxu0  ;;  %v5773_v39 = vld [vmem:[%s5171_s9] sm:$0xff] }
 0x230   : > { %6218 = vst [vmem:[#allocation33_spill] sm:$0xff] %v5752_v14  ;;  %6219 = vst [vmem:[#allocation34_spill] sm:$0xff] %v5754_v26  ;;  %v589_v3 = vrot.slane %v5773_v39, %v5759_v28  ;;  %v593_v54 = vrot.slane %v5773_v39, %v5762_v30 }
 0x232   : > { %v1704_v37 = vadd.f32 %v5564_v43, %v593_v54 }
 0x234   : > { %v5764_v55 = vpop.f32.mrb[36].mxu1  ;;  %v5766_v56 = vpop.f32.mrb[36].mxu0 }
 0x235   : > { %6220 = vst [vmem:[#allocation35_spill] sm:$0xff] %v5764_v55  ;;  %6221 = vst [vmem:[#allocation36_spill] sm:$0xff] %v5766_v56  ;;  %v5768_v57 = vpop.f32.mrb[37].mxu1  ;;  %v5770_v58 = vpop.f32.mrb[37].mxu0  ;;  %v1702_v55 = vadd.f32 %v5558_v41, %v589_v3 }
 0x236   : > { %6222 = vst [vmem:[#allocation37_spill] sm:$0xff] %v5768_v57  ;;  %6223 = vst [vmem:[#allocation38_spill] sm:$0xff] %v5770_v58  ;;  %v2174_v14 = vpop.f32.mrb[38].mxu1  ;;  %v2123_v6 = vpop.f32.mrb[38].mxu0 }
 0x237   : > { %v2175_v59 = vpop.f32.mrb[39].mxu1  ;;  %v2124_v48 = vpop.f32.mrb[39].mxu0  ;;  %v5786_v6 = vsub.s32 2, %v5756_v27  ;;  %v1706_v14 = vadd.f32 %v5571_v45, %v589_v3  ;;  %v1714_v45 = vadd.f32 %v5597_v51, %v593_v54  ;;  %v5815_v51 = vsub.s32 4, %v5756_v27 }
 0x238   : > { %v5790_v48 = vsub.s32 3, %v5756_v27  ;;  %v1708_v59 = vadd.f32 %v5575_v47, %v593_v54 }
 0x239   : > { %6224 = vst [vmem:[#allocation39_spill] sm:$0xff] %v5786_v6 }
 0x23c   : > { %v2317_v56 = vpop.f32.mrb[40].mxu1 }
 0x23d   : > { %v5781_v57 = vmul.f32 %v2317_v56, %v1702_v55  ;;  %v2319_v58 = vpop.f32.mrb[41].mxu1  ;;  %v1712_v55 = vadd.f32 %v5593_v50, %v589_v3  ;;  %v601_v56 = vrot.slane %v5773_v39, %v5790_v48 }
 0x23e   : > { %v5783_v35 = vmul.f32 %v2319_v58, %v1704_v37  ;;  %v597_v37 = vrot.slane %v5773_v39, %v5786_v6 }
 0x23f   : > { %v1759_v54 = vadd.f32 %v5573_v46, %v601_v56 }
 0x240   : > { %v2323_v26 = vpop.f32.mrb[42].mxu1  ;;  %v1757_v3 = vadd.f32 %v5566_v44, %v597_v37  ;;  %v1765_v44 = vadd.f32 %v5595_v29, %v601_v56 }
 0x241   : > { %v5793_v41 = vmul.f32 %v2323_v26, %v1706_v14  ;;  %v2325_v43 = vpop.f32.mrb[43].mxu1  ;;  %v1753_v26 = vadd.f32 %v5556_v40, %v597_v37  ;;  %v1755_v14 = vadd.f32 %v5560_v42, %v601_v56 }
 0x242   : > { %v5795_v33 = vmul.f32 %v2325_v43, %v1708_v59 }
 0x244   : > { %v2329_v58 = vpop.f32.mrb[44].mxu1 }
 0x245   : > { %v5803_v12 = vmul.f32 %v2329_v58, %v1712_v55  ;;  %v2331_v47 = vpop.f32.mrb[45].mxu1  ;;  %v6183_v55 = vsub.s32 5, %v5756_v27 }
 0x246   : > { %v5805_v31 = vmul.f32 %v2331_v47, %v1714_v45  ;;  %v1763_v47 = vadd.f32 %v5591_v49, %v597_v37 }
 0x248   : > { %v2400_v59 = vpop.f32.mrb[46].mxu1 }
 0x249   : > { %v5809_v43 = vmul.f32 %v2400_v59, %v1753_v26  ;;  %v2402_v11 = vpop.f32.mrb[47].mxu1  ;;  %v609_v26 = vrot.slane %v5773_v39, %v6183_v55 }
 0x24a   : > { %v5811_v50 = vmul.f32 %v2402_v11, %v1755_v14  ;;  %v605_v11 = vrot.slane %v5773_v39, %v5815_v51 }
 0x24b   : > { %v1806_v29 = vadd.f32 %v5645_v0, %v609_v26 }
 0x24c   : > { %v2406_v45 = vpop.f32.mrb[48].mxu1  ;;  %v1804_v49 = vadd.f32 %v5639_v62, %v605_v11 }
 0x24d   : > { %v5819_v58 = vmul.f32 %v2406_v45, %v1757_v3  ;;  %v2408_v40 = vpop.f32.mrb[49].mxu1 }
 0x24e   : > { %v5821_v42 = vmul.f32 %v2408_v40, %v1759_v54 }
 0x250   : > { %v2412_v46 = vpop.f32.mrb[50].mxu1  ;;  %v5830_v14 = vpop.f32.mrb[40].mxu0 }
 0x251   : > { %6225 = vst [vmem:[#allocation40_spill] sm:$0xff] %v5830_v14  ;;  %v5832_v59 = vmul.f32 %v2412_v46, %v1763_v47  ;;  %v2414_v3 = vpop.f32.mrb[51].mxu1  ;;  %v2213_v45 = vpop.f32.mrb[41].mxu0  ;;  %v6184_v47 = vsub.s32 6, %v5756_v27  ;;  %v1808_v46 = vadd.f32 %v5651_v2, %v605_v11  ;;  %v1816_v2 = vadd.f32 %v5673_v10, %v609_v26  ;;  %v5859_v14 = vld [vmem:[%s5171_s9 + $0x8] sm:$0xff] }
 0x252   : > { %v5834_v54 = vmul.f32 %v2414_v3, %v1765_v44  ;;  %v5836_v40 = vpop.f32.mrb[42].mxu0  ;;  %v1810_v44 = vadd.f32 %v5656_v5, %v609_v26  ;;  %v629_v10 = vrot.slane %v5859_v14, %v5786_v6 }
 0x253   : > { %6226 = vst [vmem:[#allocation41_spill] sm:$0xff] %v5836_v40  ;;  %v2216_v37 = vpop.f32.mrb[43].mxu0 }
 0x254   : > { %v2483_v56 = vpop.f32.mrb[52].mxu1 }
 0x255   : > { %v5840_v38 = vmul.f32 %v2483_v56, %v1804_v49  ;;  %v2485_v55 = vpop.f32.mrb[53].mxu1 }
 0x256   : > { %v5842_v60 = vmul.f32 %v2485_v55, %v1806_v29  ;;  %v613_v55 = vrot.slane %v5773_v39, %v6184_v47  ;;  %v1814_v29 = vadd.f32 %v5667_v8, %v605_v11  ;;  %v625_v8 = vrot.slane %v5859_v14, %v5762_v30 }
 0x257   : > { %v621_v47 = vrot.slane %v5859_v14, %v5759_v28 }
 0x258   : > { %v2489_v3 = vpop.f32.mrb[54].mxu1  ;;  %v5847_v45 = vpop.f32.mrb[44].mxu0 }
 0x259   : > { %6227 = vst [vmem:[#allocation42_spill] sm:$0xff] %v5847_v45  ;;  %v5849_v62 = vmul.f32 %v2489_v3, %v1808_v46  ;;  %v2491_v37 = vpop.f32.mrb[55].mxu1  ;;  %v2221_v0 = vpop.f32.mrb[45].mxu0 }
 0x25a   : > { %v5851_v40 = vmul.f32 %v2491_v37, %v1810_v44  ;;  %v2222_v49 = vpop.f32.mrb[46].mxu0  ;;  %v1855_v44 = vadd.f32 %v5637_v61, %v613_v55  ;;  %v616_v37 = vsub.s32 7, %v5756_v27  ;;  %v1859_v0 = vadd.f32 %v5647_v1, %v613_v55 }
 0x25b   : > { %v2223_v56 = vpop.f32.mrb[47].mxu0  ;;  %v1865_v1 = vadd.f32 %v5665_v7, %v613_v55 }
 0x25c   : > { %v2495_v5 = vpop.f32.mrb[56].mxu1  ;;  %v617_v61 = vrot.slane %v5773_v39, %v616_v37  ;;  %v1912_v39 = vadd.f32 %v5706_v22, %v625_v8 }
 0x25d   : > { %v5861_v45 = vmul.f32 %v2495_v5, %v1814_v29  ;;  %v2497_v46 = vpop.f32.mrb[57].mxu1  ;;  %v1908_v5 = vadd.f32 %v5698_v18, %v625_v8  ;;  %v1906_v18 = vadd.f32 %v5694_v16, %v621_v47 }
 0x25e   : > { %v5863_v3 = vmul.f32 %v2497_v46, %v1816_v2  ;;  %v1957_v46 = vadd.f32 %v5692_v15, %v629_v10  ;;  %v1961_v15 = vadd.f32 %v5700_v19, %v629_v10  ;;  %v1918_v19 = vadd.f32 %v5714_v25, %v625_v8 }
 0x260   : > { %6228 = vst [vmem:[#allocation43_spill] sm:$0xff] %v5863_v3  ;;  %v2566_v11 = vpop.f32.mrb[48].mxu0  ;;  %v2571_v26 = vpop.f32.mrb[58].mxu1  ;;  %v1857_v3 = vadd.f32 %v5641_v63, %v617_v61  ;;  %v6229_v63 = vsub.s32 5, %v5756_v27 }
 0x261   : > { %v5872_v49 = vmul.f32 %v2566_v11, %v1855_v44  ;;  %v5874_v29 = vmul.f32 %v2571_v26, %v1859_v0  ;;  %v4231_v56 = vpop.f32.mrb[59].mxu1  ;;  %v4228_v2 = vpop.f32.mrb[49].mxu0 }
 0x262   : > { %v641_v22 = vrot.slane %v5859_v14, %v6229_v63 }
 0x264   : > { %v2576_v6 = vpop.f32.mrb[60].mxu1  ;;  %v2742_v44 = vpop.f32.mrb[50].mxu0 }
 0x265   : > { %v5884_v11 = vmul.f32 %v2576_v6, %v1865_v1  ;;  %v3629_v0 = vmul.f32 %v2742_v44, %v1908_v5  ;;  %v4234_v26 = vpop.f32.mrb[61].mxu1  ;;  %v2744_v56 = vpop.f32.mrb[51].mxu0 }
 0x266   : > { %v3630_v2 = vmul.f32 %v2744_v56, %v1957_v46 }
 0x267   : > { %v5889_v7 = vadd.f32 %v3629_v0, %v5809_v43  ;;  %v1861_v0 = vadd.f32 %v5654_v4, %v617_v61 }
 0x268   : > { %v5894_v55 = vadd.f32 %v3630_v2, %v5811_v50  ;;  %v2659_v6 = vpop.f32.mrb[62].mxu1  ;;  %v2748_v1 = vpop.f32.mrb[52].mxu0  ;;  %v1967_v2 = vadd.f32 %v5708_v23, %v629_v10  ;;  %v2010_v23 = vadd.f32 %v5722_v34, %v641_v22  ;;  %v1916_v10 = vadd.f32 %v5710_v13, %v621_v47 }
 0x269   : > { %v3627_v5 = vmul.f32 %v2659_v6, %v1857_v3  ;;  %v3636_v44 = vmul.f32 %v2748_v1, %v1912_v39  ;;  %v2661_v26 = vpop.f32.mrb[63].mxu1  ;;  %v2750_v46 = vpop.f32.mrb[53].mxu0  ;;  %v1910_v3 = vadd.f32 %v5702_v20, %v621_v47  ;;  %v1867_v20 = vadd.f32 %v5671_v9, %v617_v61 }
 0x26a   : > { %v3628_v56 = vmul.f32 %v2661_v26, %v1906_v18  ;;  %v3637_v43 = vmul.f32 %v2750_v46, %v1961_v15  ;;  %v2014_v13 = vadd.f32 %v5730_v53, %v641_v22 }
 0x26b   : > { %v5902_v16 = vadd.f32 %v3627_v5, %v5781_v57  ;;  %v5905_v50 = vadd.f32 %v3636_v44, %v5819_v58  ;;  %v633_v58 = vrot.slane %v5859_v14, %v5790_v48  ;;  %v637_v44 = vrot.slane %v5859_v14, %v5815_v51 }
 0x26c   : > { %v5910_v39 = vadd.f32 %v3628_v56, %v5783_v35  ;;  %v5913_v18 = vadd.f32 %v3637_v43, %v5821_v42  ;;  %v2665_v15 = vpop.f32.mrb[64].mxu1  ;;  %v2754_v4 = vpop.f32.mrb[54].mxu0 }
 0x26d   : > { %v3634_v6 = vmul.f32 %v2665_v15, %v1861_v0  ;;  %v3643_v25 = vmul.f32 %v2754_v4, %v1918_v19  ;;  %v2667_v8 = vpop.f32.mrb[65].mxu1  ;;  %v2756_v57 = vpop.f32.mrb[55].mxu0  ;;  %v1959_v43 = vadd.f32 %v5696_v17, %v633_v58 }
 0x26e   : > { %v3635_v1 = vmul.f32 %v2667_v8, %v1910_v3  ;;  %v3644_v5 = vmul.f32 %v2756_v57, %v1967_v2  ;;  %v5947_v2 = vld [vmem:[%s5171_s9 + $0x10] sm:$0x1f]  ;;  %v2012_v8 = vadd.f32 %v5726_v36, %v637_v44  ;;  %v6231_v36 = vld [vmem:[#allocation28_spill] sm:$0xff] }
 0x26f   : > { %v5920_v35 = vadd.f32 %v3634_v6, %v5793_v41  ;;  %v5923_v42 = vadd.f32 %v3643_v25, %v5832_v59  ;;  %v653_v53 = vrot.slane %v5947_v2, %v5759_v28  ;;  %v2020_v25 = vadd.f32 %v5738_v52, %v641_v22 }
 0x270   : > { %v5929_v26 = vadd.f32 %v3635_v1, %v5795_v33  ;;  %v5932_v46 = vadd.f32 %v3644_v5, %v5834_v54  ;;  %v2671_v9 = vpop.f32.mrb[66].mxu1  ;;  %v2908_v34 = vpop.f32.mrb[56].mxu0  ;;  %v2008_v54 = vadd.f32 %v5718_v32, %v637_v44  ;;  %v657_v57 = vrot.slane %v5947_v2, %v5762_v30 }
 0x271   : > { %v3641_v61 = vmul.f32 %v2671_v9, %v1867_v20  ;;  %v3633_v41 = vmul.f32 %v2908_v34, %v2010_v23  ;;  %v2673_v63 = vpop.f32.mrb[67].mxu1  ;;  %v4241_v56 = vpop.f32.mrb[57].mxu0  ;;  %v2110_v9 = vadd.f32 %v6231_v36, %v653_v53  ;;  %v649_v34 = vrot.slane %v5859_v14, %v616_v37 }
 0x272   : > { %v3642_v59 = vmul.f32 %v2673_v63, %v1916_v10  ;;  %v1969_v10 = vadd.f32 %v5712_v24, %v633_v58  ;;  %v6233_v63 = vld [vmem:[#allocation30_spill] sm:$0xff] }
 0x273   : > { %v5937_v47 = vadd.f32 %v3641_v61, %v5803_v12  ;;  %v5940_v33 = vadd.f32 %v3633_v41, %v5872_v49  ;;  %v1963_v49 = vadd.f32 %v5704_v21, %v633_v58  ;;  %v6232_v61 = vld [vmem:[#allocation25_spill] sm:$0xff]  ;;  %v2112_v56 = vadd.f32 %v6233_v63, %v657_v57  ;;  %v6242_v63 = vld [vmem:[#allocation38_spill] sm:$0xff] }
 0x274   : > { %v5944_v0 = vadd.f32 %v3642_v59, %v5805_v31  ;;  %v2825_v19 = vpop.f32.mrb[68].mxu1  ;;  %v2913_v3 = vpop.f32.mrb[58].mxu0  ;;  %v2018_v41 = vadd.f32 %v6232_v61, %v637_v44 }
 0x275   : > { %v3631_v15 = vmul.f32 %v2825_v19, %v1959_v43  ;;  %v3640_v4 = vmul.f32 %v2913_v3, %v2014_v13  ;;  %v2827_v17 = vpop.f32.mrb[69].mxu1  ;;  %v4244_v6 = vpop.f32.mrb[59].mxu0  ;;  %v6234_v3 = vld [vmem:[#allocation20_spill] sm:$0xff] }
 0x276   : > { %v3632_v12 = vmul.f32 %v2827_v17, %v2008_v54  ;;  %v6237_v17 = vld [vmem:[#allocation34_spill] sm:$0xff] }
 0x277   : > { %v5954_v32 = vadd.f32 %v3631_v15, %v5840_v38  ;;  %v5957_v31 = vadd.f32 %v3640_v4, %v5874_v29  ;;  %v6230_v38 = vsub.s32 6, %v5756_v27  ;;  %v6235_v27 = vld [vmem:[#allocation32_spill] sm:$0xff]  ;;  %v2116_v6 = vadd.f32 %v6237_v17, %v657_v57 }
 0x278   : > { %v5963_v1 = vadd.f32 %v3632_v12, %v5842_v60  ;;  %v2831_v28 = vpop.f32.mrb[70].mxu1  ;;  %v2918_v5 = vpop.f32.mrb[60].mxu0  ;;  %v2114_v4 = vadd.f32 %v6235_v27, %v653_v53  ;;  %v6238_v12 = vld [vmem:[#allocation43_spill] sm:$0xff] }
 0x279   : > { %v3638_v20 = vmul.f32 %v2831_v28, %v1963_v49  ;;  %v3647_v21 = vmul.f32 %v2918_v5, %v2020_v25  ;;  %v2833_v23 = vpop.f32.mrb[71].mxu1  ;;  %v4247_v52 = vpop.f32.mrb[61].mxu0  ;;  %v645_v22 = vrot.slane %v5859_v14, %v6230_v38  ;;  %v6239_v38 = vld [vmem:[#allocation22_spill] sm:$0xff] }
 0x27a   : > { %v3639_v29 = vmul.f32 %v2833_v23, %v2012_v8 }
 0x27b   : > { %v5971_v30 = vadd.f32 %v3638_v20, %v5849_v62  ;;  %v5974_v60 = vadd.f32 %v3647_v21, %v5884_v11  ;;  %v2059_v15 = vadd.f32 %v6234_v3, %v645_v22  ;;  %v6244_v3 = vld [vmem:[#allocation24_spill] sm:$0xff] }
 0x27c   : > { %v5982_v59 = vadd.f32 %v3639_v29, %v5851_v40  ;;  %v2837_v24 = vpop.f32.mrb[72].mxu1  ;;  %v3084_v58 = vpop.f32.mrb[62].mxu0  ;;  %v6236_v40 = vld [vmem:[#allocation21_spill] sm:$0xff]  ;;  %v2063_v29 = vadd.f32 %v6239_v38, %v645_v22 }
 0x27d   : > { %v3645_v43 = vmul.f32 %v2837_v24, %v1969_v10  ;;  %v3671_v13 = vmul.f32 %v3084_v58, %v2110_v9  ;;  %v2839_v62 = vpop.f32.mrb[73].mxu1  ;;  %v3086_v54 = vpop.f32.mrb[63].mxu0  ;;  %v2061_v44 = vadd.f32 %v6236_v40, %v649_v34  ;;  %v6240_v10 = vld [vmem:[#allocation36_spill] sm:$0xff] }
 0x27e   : > { %v3646_v19 = vmul.f32 %v2839_v62, %v2018_v41  ;;  %v3672_v11 = vmul.f32 %v3086_v54, %v2112_v56  ;;  %v2120_v36 = vadd.f32 %v6240_v10, %v653_v53  ;;  %v2122_v56 = vadd.f32 %v6242_v63, %v657_v57  ;;  %v6243_v54 = vld [vmem:[#allocation39_spill] sm:$0xff]  ;;  %v6245_v57 = vld [vmem:[#allocation40_spill] sm:$0xff] }
 0x27f   : > { %v5987_v14 = vadd.f32 %v3645_v43, %v5861_v45  ;;  %v5990_v37 = vadd.f32 %v3671_v13, %v5889_v7  ;;  %v669_v7 = vrot.slane %v5947_v2, %v5815_v51  ;;  %v6250_v63 = vld [vmem:[#allocation31_spill] sm:$0xff] }
 0x280   : > { %v5995_v49 = vadd.f32 %v3646_v19, %v6238_v12  ;;  %v3001_v25 = vpop.f32.mrb[74].mxu1  ;;  %v3090_v8 = vpop.f32.mrb[64].mxu0  ;;  %v5998_v28 = vadd.f32 %v3672_v11, %v5894_v55  ;;  %v6241_v55 = vld [vmem:[#allocation23_spill] sm:$0xff] }
 0x281   : > { %v3669_v5 = vmul.f32 %v3001_v25, %v2059_v15  ;;  %v3678_v20 = vmul.f32 %v3090_v8, %v2114_v4  ;;  %v3003_v21 = vpop.f32.mrb[75].mxu1  ;;  %v3092_v45 = vpop.f32.mrb[65].mxu0  ;;  %v2065_v41 = vadd.f32 %v6241_v55, %v649_v34  ;;  %v2069_v15 = vadd.f32 %v6244_v3, %v645_v22 }
 0x282   : > { %v3670_v23 = vmul.f32 %v3003_v21, %v2061_v44  ;;  %v3679_v52 = vmul.f32 %v3092_v45, %v2116_v6  ;;  %v2212_v27 = vadd.f32 %v6245_v57, %v669_v7  ;;  %v665_v44 = vrot.slane %v5947_v2, %v5790_v48  ;;  %v6248_v45 = vld [vmem:[#allocation41_spill] sm:$0xff] }
 0x283   : > { %v6005_v9 = vadd.f32 %v3669_v5, %v5902_v16  ;;  %v6008_v61 = vadd.f32 %v3678_v20, %v5905_v50  ;;  %v661_v50 = vrot.slane %v5947_v2, %v6243_v54 }
 0x284   : > { %v3007_v24 = vpop.f32.mrb[76].mxu1  ;;  %v3096_v58 = vpop.f32.mrb[66].mxu0  ;;  %v6013_v51 = vadd.f32 %v3670_v23, %v5910_v39  ;;  %v6016_v43 = vadd.f32 %v3679_v52, %v5913_v18  ;;  %v6246_v18 = vld [vmem:[#allocation26_spill] sm:$0xff] }
 0x285   : > { %v3676_v13 = vmul.f32 %v3007_v24, %v2063_v29  ;;  %v3685_v53 = vmul.f32 %v3096_v58, %v2120_v36  ;;  %v3009_v62 = vpop.f32.mrb[77].mxu1  ;;  %v3098_v16 = vpop.f32.mrb[67].mxu0  ;;  %v2071_v40 = vadd.f32 %v6246_v18, %v649_v34  ;;  %v2215_v34 = vadd.f32 %v6248_v45, %v669_v7 }
 0x286   : > { %v3677_v19 = vmul.f32 %v3009_v62, %v2065_v41  ;;  %v3686_v11 = vmul.f32 %v3098_v16, %v2122_v56  ;;  %v2165_v56 = vadd.f32 %v6250_v63, %v661_v50 }
 0x287   : > { %v6023_v4 = vadd.f32 %v3676_v13, %v5920_v35  ;;  %v6026_v39 = vadd.f32 %v3685_v53, %v5923_v42  ;;  %v6247_v42 = vld [vmem:[#allocation27_spill] sm:$0xff]  ;;  %v6252_v13 = vld [vmem:[#allocation33_spill] sm:$0xff] }
 0x288   : > { %v3013_v17 = vpop.f32.mrb[78].mxu1  ;;  %v3250_v6 = vpop.f32.mrb[68].mxu0  ;;  %v6032_v12 = vadd.f32 %v3677_v19, %v5929_v26  ;;  %v6035_v22 = vadd.f32 %v3686_v11, %v5932_v46  ;;  %v2161_v21 = vadd.f32 %v6247_v42, %v661_v50  ;;  %v6249_v26 = vld [vmem:[#allocation29_spill] sm:$0xff]  ;;  %v2167_v53 = vadd.f32 %v6252_v13, %v665_v44 }
 0x289   : > { %v3683_v25 = vmul.f32 %v3013_v17, %v2069_v15  ;;  %v3675_v8 = vmul.f32 %v3250_v6, %v2212_v27  ;;  %v3015_v35 = vpop.f32.mrb[79].mxu1  ;;  %v4254_v5 = vpop.f32.mrb[69].mxu0  ;;  %v2163_v2 = vadd.f32 %v6249_v26, %v665_v44  ;;  %v6254_v27 = vld [vmem:[#allocation37_spill] sm:$0xff] }
 0x28a   : > { %v3684_v20 = vmul.f32 %v3015_v35, %v2071_v40  ;;  %v2173_v18 = vadd.f32 %v6254_v27, %v665_v44 }
 0x28b   : > { %v6040_v23 = vadd.f32 %v3683_v25, %v5937_v47  ;;  %v6043_v48 = vadd.f32 %v3675_v8, %v5940_v33  ;;  %v6251_v47 = vld [vmem:[#allocation42_spill] sm:$0xff] }
 0x28c   : > { %v3167_v46 = vpop.f32.mrb[80].mxu1  ;;  %v3255_v52 = vpop.f32.mrb[70].mxu0  ;;  %v6047_v38 = vadd.f32 %v3684_v20, %v5944_v0  ;;  %v2220_v24 = vadd.f32 %v6251_v47, %v669_v7  ;;  %v6253_v7 = vld [vmem:[#allocation35_spill] sm:$0xff] }
 0x28d   : > { %v3673_v29 = vmul.f32 %v3167_v46, %v2161_v21  ;;  %v3682_v10 = vmul.f32 %v3255_v52, %v2215_v34  ;;  %v3169_v36 = vpop.f32.mrb[81].mxu1  ;;  %v4257_v55 = vpop.f32.mrb[71].mxu0  ;;  %v2171_v57 = vadd.f32 %v6253_v7, %v661_v50 }
 0x28e   : > { %v3674_v41 = vmul.f32 %v3169_v36, %v2163_v2 }
 0x28f   : > { %v6052_v33 = vadd.f32 %v3673_v29, %v5954_v32  ;;  %v6055_v58 = vadd.f32 %v3682_v10, %v5957_v31 }
 0x290   : > { %v3173_v62 = vpop.f32.mrb[82].mxu1  ;;  %v3260_v0 = vpop.f32.mrb[72].mxu0  ;;  %v6060_v16 = vadd.f32 %v3674_v41, %v5963_v1 }
 0x291   : > { %v3680_v54 = vmul.f32 %v3173_v62, %v2165_v56  ;;  %v3689_v19 = vmul.f32 %v3260_v0, %v2220_v24  ;;  %v3175_v11 = vpop.f32.mrb[83].mxu1  ;;  %v4260_v3 = vpop.f32.mrb[73].mxu0 }
 0x292   : > { %v3681_v15 = vmul.f32 %v3175_v11, %v2167_v53 }
 0x293   : > { %v6064_v32 = vadd.f32 %v3680_v54, %v5971_v30  ;;  %v6067_v31 = vadd.f32 %v3689_v19, %v5974_v60 }
 0x294   : > { %v3179_v40 = vpop.f32.mrb[84].mxu1  ;;  %v3426_v17 = vpop.f32.mrb[74].mxu0  ;;  %v6071_v1 = vadd.f32 %v3681_v15, %v5982_v59 }
 0x295   : > { %v3687_v6 = vmul.f32 %v3179_v40, %v2171_v57  ;;  %v3713_v25 = vadd.f32 %v5990_v37, %v3426_v17  ;;  %v3181_v8 = vpop.f32.mrb[85].mxu1  ;;  %v3428_v35 = vpop.f32.mrb[75].mxu0 }
 0x296   : > { %v3688_v5 = vmul.f32 %v3181_v8, %v2173_v18  ;;  %v3714_v50 = vadd.f32 %v5998_v28, %v3428_v35 }
 0x297   : > { %3734 = vst [vmem:[%s6075_s15 + $0x10] sm:$0xff] %v3713_v25  ;;  %v3708_v30 = vadd.f32 %v3687_v6, %v5987_v14 }
 0x298   : > { %3735 = vst [vmem:[%s6075_s15 + $0x18] sm:$0xff] %v3714_v50  ;;  %v3343_v60 = vpop.f32.mrb[86].mxu1  ;;  %v3432_v59 = vpop.f32.mrb[76].mxu0  ;;  %v3709_v37 = vadd.f32 %v3688_v5, %v5995_v49 }
 0x299   : > { %v3711_v44 = vadd.f32 %v6005_v9, %v3343_v60  ;;  %v3720_v28 = vadd.f32 %v6008_v61, %v3432_v59  ;;  %v3345_v20 = vpop.f32.mrb[87].mxu1  ;;  %v3434_v42 = vpop.f32.mrb[77].mxu0 }
 0x29a   : > { %v3712_v21 = vadd.f32 %v6013_v51, %v3345_v20  ;;  %v3721_v45 = vadd.f32 %v6016_v43, %v3434_v42 }
 0x29b   : > { %3732 = vst [vmem:[%s6075_s15] sm:$0xff] %v3711_v44  ;;  %3741 = vst [vmem:[%s6075_s15 + $0x48] sm:$0xff] %v3720_v28 }
 0x29c   : > { %3733 = vst [vmem:[%s6075_s15 + $0x8] sm:$0xff] %v3712_v21  ;;  %3742 = vst [vmem:[%s6075_s15 + $0x50] sm:$0xff] %v3721_v45  ;;  %v3349_v14 = vpop.f32.mrb[88].mxu1  ;;  %v3438_v49 = vpop.f32.mrb[78].mxu0 }
 0x29d   : > { %v3718_v9 = vadd.f32 %v6023_v4, %v3349_v14  ;;  %v3727_v61 = vadd.f32 %v6026_v39, %v3438_v49  ;;  %v3351_v34 = vpop.f32.mrb[89].mxu1  ;;  %v3440_v26 = vpop.f32.mrb[79].mxu0 }
 0x29e   : > { %v3719_v51 = vadd.f32 %v6032_v12, %v3351_v34  ;;  %v3728_v43 = vadd.f32 %v6035_v22, %v3440_v26 }
 0x29f   : > { %3739 = vst [vmem:[%s6075_s15 + $0x38] sm:$0xff] %v3718_v9  ;;  %3748 = vst [vmem:[%s6075_s15 + $0x80] sm:$0xff] %v3727_v61 }
 0x2a0   : > { %3740 = vst [vmem:[%s6075_s15 + $0x40] sm:$0xff] %v3719_v51  ;;  %3749 = vst [vmem:[%s6075_s15 + $0x88] sm:$0xff] %v3728_v43  ;;  %v3355_v2 = vpop.f32.mrb[90].mxu1  ;;  %v3592_v46 = vpop.f32.mrb[80].mxu0 }
 0x2a1   : > { %v3725_v4 = vadd.f32 %v6040_v23, %v3355_v2  ;;  %v3717_v39 = vadd.f32 %v6043_v48, %v3592_v46  ;;  %v3357_v52 = vpop.f32.mrb[91].mxu1  ;;  %v4267_v29 = vpop.f32.mrb[81].mxu0 }
 0x2a2   : > { %v3726_v10 = vadd.f32 %v6047_v38, %v3357_v52 }
 0x2a3   : > { %3746 = vst [vmem:[%s6075_s15 + $0x70] sm:$0xff] %v3725_v4  ;;  %3738 = vst [vmem:[%s6075_s15 + $0x30] sm:$0xff] %v3717_v39 }
 0x2a4   : > { %3747 = vst [vmem:[%s6075_s15 + $0x78] sm:$0xff] %v3726_v10  ;;  %v3509_v12 = vpop.f32.mrb[92].mxu1  ;;  %v3597_v22 = vpop.f32.mrb[82].mxu0 }
 0x2a5   : > { %v3715_v36 = vadd.f32 %v6052_v33, %v3509_v12  ;;  %v3724_v55 = vadd.f32 %v6055_v58, %v3597_v22  ;;  %v3511_v23 = vpop.f32.mrb[93].mxu1  ;;  %v4270_v48 = vpop.f32.mrb[83].mxu0 }
 0x2a6   : > { %v3716_v41 = vadd.f32 %v6060_v16, %v3511_v23 }
 0x2a7   : > { %3736 = vst [vmem:[%s6075_s15 + $0x20] sm:$0xff] %v3715_v36  ;;  %3745 = vst [vmem:[%s6075_s15 + $0x68] sm:$0xff] %v3724_v55 }
 0x2a8   : > { %3737 = vst [vmem:[%s6075_s15 + $0x28] sm:$0xff] %v3716_v41  ;;  %v3515_v38 = vpop.f32.mrb[94].mxu1  ;;  %v3602_v63 = vpop.f32.mrb[84].mxu0 }
 0x2a9   : > { %v3722_v56 = vadd.f32 %v6064_v32, %v3515_v38  ;;  %v3731_v47 = vadd.f32 %v6067_v31, %v3602_v63  ;;  %v3517_v24 = vpop.f32.mrb[95].mxu1  ;;  %v4273_v33 = vpop.f32.mrb[85].mxu0 }
 0x2aa   : > { %v3723_v58 = vadd.f32 %v6071_v1, %v3517_v24 }
 0x2ab   : > { %3743 = vst [vmem:[%s6075_s15 + $0x58] sm:$0xff] %v3722_v56  ;;  %3752 = vst [vmem:[%s6075_s15 + $0xa0] sm:$0xff] %v3731_v47 }
 0x2ac   : > { %3744 = vst [vmem:[%s6075_s15 + $0x60] sm:$0xff] %v3723_v58  ;;  %v3521_v13 = vpop.f32.mrb[96].mxu1 }
 0x2ad   : > { %v3729_v53 = vadd.f32 %v3708_v30, %v3521_v13  ;;  %v3523_v62 = vpop.f32.mrb[97].mxu1 }
 0x2ae   : > { %v3730_v0 = vadd.f32 %v3709_v37, %v3523_v62 }
 0x2af   : > { %3750 = vst [vmem:[%s6075_s15 + $0x90] sm:$0xff] %v3729_v53 }
 0x2b0   : > { %3751 = vst [vmem:[%s6075_s15 + $0x98] sm:$0xff] %v3730_v0 }
 0x2b1   : > { %4843 = shalt.err (!%p4840_p13)
}
 0x2b2   : > { %s4844_s17 = scalar_lea.hbm %s6120_s30, 2688  ;;  %s4848_s9 = scalar_lea.hbm %s6173_s5, 5376 }
 0x2b3   : > { %p4845_p1 = scmp.ne.s32.totalorder %s6120_s30, %s4844_s17  ;;  %p4849_p2 = scmp.lt.u32.totalorder %s6120_s30, %s6173_s5 }
 0x2b4   : > { %p4850_p7 = scmp.lt.u32.totalorder %s4848_s9, %s4844_s17  ;;  %p4852_p12 = scmp.lt.u32.totalorder %s4844_s17, %s6120_s30 }
 0x2b5   : > { %p4846_p9 = pnand %p4845_p1, %p6255_p0 }
 0x2b6   : > { %p4851_p5 = por %p4850_p7, %p4849_p2 }
 0x2b7   : > { %p4847_p6 = pneg %p4846_p9 }
 0x2b8   : > { %p4853_p8 = por %p4852_p12, %p4851_p5 }
 0x2ba   : > { %p4854_p10 = pnand %p4853_p8, %p4847_p6 }
 0x2bc   : > { %4857 = shalt.err (!%p4854_p10)
}
 0x2bd   : > { %s4921_s28 = smov 896   ;;  %s4922_s25 = smov 56  }
 0x2be   : > { %4359 = dma.vmem_to_hbm [thread:$0]  (%p6255_p0), %s6122_s0, 2688, %s6120_s30, %s3754_s22, %s4921_s28, %s4921_s28, %s4922_s25  }
 0x2bf PF: > { %s6256_s26 = sld [smem:[#allocation15_spill]]  ;;  %s6257_s2 = sld [smem:[#allocation19_spill]] }
 0x2c0   : > { %p6259_p4 = scmp.ge.s32.totalorder %s4904_s21, 2 }
 0x2c5   : > { %s3782_s14 = sand.u32 1, %s6256_s26   ;;  %p6258_p11 = scmp.ne.s32.totalorder %s6257_s2, 0 }
 0x2c6   : > { %s3783_s12 = scalar_lea.sflag [#allocation4], %s3782_s14 }
 0x2c7   : > { %p4375_p3 = pnand %p6259_p4, %p6258_p11 }
 0x2c9   : > { %4887 = dma.done.wait (!%p4375_p3), %s3783_s12, 2688  }
 0x2ca   : > { %4889 = vsyncadd (!%p4375_p3), %s3783_s12, 4294964608  ;;  %s6260_s21 = sld [smem:[#allocation17_spill]]  ;;  %s6261_s15 = sld [smem:[#allocation16_spill]] }
 0x2cb   : > { %s6262_s20 = sld [smem:[#allocation18_spill]]  ;;  %s6263_s18 = smov %s4896_s19 }
 0x2d0   : > { %p24_p13 = scmp.ge.s32.totalorder %s6260_s21, 4   ;;  %s6264_s19 = smov %s6261_s15 }
 0x2d2   :  { %26 = sbr.rel (!%p24_p13) target bundleno = 12 (0xc), region = 128 }
 0x2d9   :  { %3788 = vsyncpa [#allocation3], 1 }
 0x2da   :  { %3790 = vsyncpa [#allocation3 + $0x1], 1 }
 0x2db   :  { %3791 = vsyncpa [#allocation6], 1 }
 0x2dc   :  { %3793 = vsyncpa [#allocation6 + $0x1], 1 }
 0x2dd   :  { %3794 = vsyncpa [#allocation9], 1 }
 0x2de   :  { %3796 = vsyncpa [#allocation9 + $0x1], 1 }
 0x2df   :  { %3797 = vsyncpa [#allocation4], 1 }
 0x2e0   :  { %3799 = vsyncpa [#allocation4 + $0x1], 1 }

</bundles_post_ra>
